<compile_context>
chip_gen: v7x
topology: tpu7x:2x2x1
jax: 0.10.0
libtpu: 0.0.40
codegen_flags: <defaults>
</compile_context>

<pallas_src>
import jax
import jax.numpy as jnp
from jax import lax
from jax.experimental import pallas as pl
from jax.experimental.pallas import tpu as pltpu


def _attention_kernel(q_ref, k_ref, v_ref, wp_ref, bp_ref, o_ref,
                      acc_ref, m_ref, l_ref, ctx_ref):
    """One (batch, q-tile, head, kv-tile) grid step.

    q_ref  : (1, 1, block_q, D)  scaled query projection (this batch / head / q tile)
    k_ref  : (1, 1, block_k, D)  key projection   (this batch / head / kv tile)
    v_ref  : (1, 1, block_k, D)  value projection (this batch / head / kv tile)
    wp_ref : (H, D, C)           full output-projection weight (VMEM resident)
    bp_ref : (1, C)              output-projection bias        (VMEM resident)
    o_ref  : (1, block_q, C)     output tile
    scratch: acc (block_q, C) f32, m / l (block_q, 1) f32, ctx (block_q, D) f32
    """
    h = pl.program_id(2)
    ki = pl.program_id(3)
    num_heads = pl.num_programs(2)
    num_kv = pl.num_programs(3)

    # Reset the per-head online-softmax state at the first kv tile.
    @pl.when(ki == 0)
    def _():
        m_ref[...] = jnp.full_like(m_ref, -jnp.inf)
        l_ref[...] = jnp.zeros_like(l_ref)
        ctx_ref[...] = jnp.zeros_like(ctx_ref)

    q = q_ref[0, 0]                       # (block_q, D), scale already folded in
    k = k_ref[0, 0]                       # (block_k, D)
    v = v_ref[0, 0]                       # (block_k, D)

    # Scores (block_q, block_k): contract on D, f32 accumulation on the MXU.
    s = lax.dot_general(q, k, (((1,), (1,)), ((), ())),
                        preferred_element_type=jnp.float32)

    # Flash-style online softmax (attn_drop is identity in eval mode).
    m_prev = m_ref[...]
    m_new = jnp.maximum(m_prev, jnp.max(s, axis=-1, keepdims=True))
    alpha = jnp.exp(m_prev - m_new)
    p = jnp.exp(s - m_new)
    l_ref[...] = alpha * l_ref[...] + jnp.sum(p, axis=-1, keepdims=True)
    ctx_ref[...] = alpha * ctx_ref[...] + jnp.dot(
        p.astype(v.dtype), v, preferred_element_type=jnp.float32)
    m_ref[...] = m_new

    @pl.when(ki == num_kv - 1)
    def _():
        # Normalize (EUP reciprocal on the (block_q, 1) row sums) and add this
        # head's contribution to the output projection, lane-dense over full C.
        inv_l = pl.reciprocal(l_ref[...], approx=True)
        ctx = (ctx_ref[...] * inv_l).astype(wp_ref.dtype)      # (block_q, D)
        contrib = jnp.dot(ctx, wp_ref[h],
                          preferred_element_type=jnp.float32)  # (block_q, C)

        @pl.when(h == 0)
        def _():
            acc_ref[...] = contrib + bp_ref[...]   # bias folded; no zero-init pass

        @pl.when(h > 0)
        def _():
            acc_ref[...] += contrib

        @pl.when(h == num_heads - 1)
        def _():
            # proj_drop is identity in eval mode.
            o_ref[0] = acc_ref[...].astype(o_ref.dtype)


def prepare_params(params, num_heads, dtype=None):
    """One-time parameter prep (do this once, not per forward call):
    split the fused kv projection, fold the softmax scale into the q
    projection, reshape the output projection to per-head (H, D, C), and
    optionally cast (bf16 recommended on v6e / v7x)."""
    C = params["wq"].shape[0]
    assert C % num_heads == 0
    D = C // num_heads
    scale = D ** (-0.5)
    wkv, bkv = params["wkv"], params["bkv"]
    prepped = {
        "wq": params["wq"] * scale,        # scale folded (exact)
        "bq": params["bq"] * scale,
        "wk": wkv[:, :C], "bk": bkv[:, :C],
        "wv": wkv[:, C:], "bv": bkv[:, C:],
        "wp": params["wp"].reshape(num_heads, D, C),
        "bp": params["bp"],
    }
    if dtype is not None:
        prepped = {k: v.astype(dtype) for k, v in prepped.items()}
    return prepped


def _pick_block(n, target):
    """Largest multiple-of-8 divisor of n that is <= target, else n itself."""
    cap = min(n, target)
    b = cap - cap % 8
    while b >= 8:
        if n % b == 0:
            return b
        b -= 8
    # TODO(synk): pad N and mask the tail instead of a single full-size block.
    return n


def _vmem_limit_bytes():
    """Generation-aware VMEM limit (leave ~20% headroom for Mosaic scratch)."""
    try:
        return int(pltpu.get_tpu_info().vmem_capacity_bytes * 0.8)
    except Exception:
        return None   # fall back to the compiler's default scoped limit


def cross_attention(q, kv, prepped, num_heads, *, block_q=None, block_k=None):
    """q: (B, Nq, C), kv: (B, Nk, C); prepped from prepare_params().
    Returns (B, Nq, C) in the prepared-parameter dtype."""
    B, Nq, C = q.shape
    Bk, Nk, Ck = kv.shape
    assert Bk == B and Ck == C
    assert C % num_heads == 0
    D = C // num_heads
    cdt = prepped["wq"].dtype

    # --- Projections: plain XLA GEMMs, computed ONCE (not per q tile / per
    # head inside the kernel).  Scale is already folded into wq / bq.
    q = q.astype(cdt)
    kv = kv.astype(cdt)
    qp = jnp.dot(q, prepped["wq"]) + prepped["bq"]
    kp = jnp.dot(kv, prepped["wk"]) + prepped["bk"]
    vp = jnp.dot(kv, prepped["wv"]) + prepped["bv"]
    # Per-head layout (B, H, N, D) so the kernel gets lane-dense (.., D) tiles
    # for any head_dim (64, 128, ...).
    qp = qp.reshape(B, Nq, num_heads, D).transpose(0, 2, 1, 3)
    kp = kp.reshape(B, Nk, num_heads, D).transpose(0, 2, 1, 3)
    vp = vp.reshape(B, Nk, num_heads, D).transpose(0, 2, 1, 3)

    if block_q is None:
        block_q = _pick_block(Nq, 256)
    if block_k is None:
        block_k = _pick_block(Nk, 512)
    assert Nq % block_q == 0 and Nk % block_k == 0
    n_q = Nq // block_q
    n_k = Nk // block_k

    return pl.pallas_call(
        _attention_kernel,
        out_shape=jax.ShapeDtypeStruct((B, Nq, C), cdt),
        grid_spec=pltpu.PrefetchScalarGridSpec(
            num_scalar_prefetch=0,
            grid=(B, n_q, num_heads, n_k),
            in_specs=[
                pl.BlockSpec((1, 1, block_q, D),
                             lambda b, qi, h, ki: (b, h, qi, 0)),      # q proj
                pl.BlockSpec((1, 1, block_k, D),
                             lambda b, qi, h, ki: (b, h, ki, 0)),      # k proj
                pl.BlockSpec((1, 1, block_k, D),
                             lambda b, qi, h, ki: (b, h, ki, 0)),      # v proj
                # Output-projection weight / bias: constant block index ->
                # DMA'd once and kept VMEM-resident (no per-head weight churn).
                pl.BlockSpec((num_heads, D, C),
                             lambda b, qi, h, ki: (0, 0, 0)),          # Wp (H,D,C)
                pl.BlockSpec((1, C), lambda b, qi, h, ki: (0, 0)),     # bp
            ],
            out_specs=pl.BlockSpec((1, block_q, C),
                                   lambda b, qi, h, ki: (b, qi, 0)),
            scratch_shapes=[
                pltpu.VMEM((block_q, C), jnp.float32),   # output-proj accumulator
                pltpu.VMEM((block_q, 1), jnp.float32),   # running max
                pltpu.VMEM((block_q, 1), jnp.float32),   # running sum
                pltpu.VMEM((block_q, D), jnp.float32),   # running context
            ],
        ),
        compiler_params=pltpu.CompilerParams(
            dimension_semantics=("parallel", "parallel", "arbitrary", "arbitrary"),
            vmem_limit_bytes=_vmem_limit_bytes()),
    )(qp, kp, vp, prepped["wp"], prepped["bp"])


def reference_cross_attention(q, kv, params, num_heads):
    """Pure-JAX f32 reference mirroring the PyTorch forward (eval mode)."""
    B, N, C = q.shape
    D = C // num_heads
    scale = D ** (-0.5)
    qp = q.astype(jnp.float32) @ params["wq"] + params["bq"][0]
    kvp = kv.astype(jnp.float32) @ params["wkv"] + params["bkv"][0]
    k, v = kvp[..., :C], kvp[..., C:]
    qh = qp.reshape(B, N, num_heads, D).transpose(0, 2, 1, 3)
    kh = k.reshape(B, N, num_heads, D).transpose(0, 2, 1, 3)
    vh = v.reshape(B, N, num_heads, D).transpose(0, 2, 1, 3)
    attn = jax.nn.softmax((qh @ kh.transpose(0, 1, 3, 2)) * scale, axis=-1)
    x = (attn @ vh).transpose(0, 2, 1, 3).reshape(B, N, C)
    return x @ params["wp"] + params["bp"][0]


if __name__ == "__main__":
    # Small shapes consistent with the module: head_dim = 64 (typical timm),
    # multiple q tiles and kv tiles to exercise the online-softmax / per-head
    # accumulation paths.
    B, N, C = 2, 256, 256
    num_heads = 4

    key = jax.random.PRNGKey(0)
    kq, kkv, k1, k2, k3, k4, k5, k6 = jax.random.split(key, 8)
    q = jax.random.normal(kq, (B, N, C), dtype=jnp.float32)
    kv = jax.random.normal(kkv, (B, N, C), dtype=jnp.float32)

    # Synthetic parameters, stored (in, out): y = x @ W + b.
    params = {
        "wq":  jax.random.normal(k1, (C, C), dtype=jnp.float32) * 0.05,
        "bq":  jax.random.normal(k2, (1, C), dtype=jnp.float32) * 0.05,
        "wkv": jax.random.normal(k3, (C, 2 * C), dtype=jnp.float32) * 0.05,
        "bkv": jax.random.normal(k4, (1, 2 * C), dtype=jnp.float32) * 0.05,
        "wp":  jax.random.normal(k5, (C, C), dtype=jnp.float32) * 0.05,
        "bp":  jax.random.normal(k6, (1, C), dtype=jnp.float32) * 0.05,
    }

    ref = reference_cross_attention(q, kv, params, num_heads)

    # f32 path: sanity check against the pure-JAX reference.
    prepped_f32 = prepare_params(params, num_heads)
    out = jax.block_until_ready(
        cross_attention(q, kv, prepped_f32, num_heads, block_q=128, block_k=128))
    assert out.shape == (B, N, C)
    err = float(jnp.max(jnp.abs(out - ref)))
    assert err < 2e-2, f"f32 max abs err = {err}"

    # bf16 path (recommended on v6e / v7x: full-rate MXU, half the DMA bytes).
    prepped_bf16 = prepare_params(params, num_heads, dtype=jnp.bfloat16)
    out_bf16 = jax.block_until_ready(
        cross_attention(q, kv, prepped_bf16, num_heads, block_q=128, block_k=128))
    assert out_bf16.dtype == jnp.bfloat16
    err_bf16 = float(jnp.max(jnp.abs(out_bf16.astype(jnp.float32) - ref)))
    assert err_bf16 < 1.5e-1, f"bf16 max abs err = {err_bf16}"

    print("KERNEL_OK")
</pallas_src>

<mosaic_0001>
module attributes {stable_mosaic.version = 11 : i64} {
  func.func @_attention_kernel(%arg0: i32, %arg1: i32, %arg2: i32, %arg3: i32, %arg4: memref<1x1x128x64xf32, #tpu.memory_space<vmem>>, %arg5: memref<1x1x128x64xf32, #tpu.memory_space<vmem>>, %arg6: memref<1x1x128x64xf32, #tpu.memory_space<vmem>>, %arg7: memref<4x64x256xf32, #tpu.memory_space<vmem>>, %arg8: memref<1x256xf32, #tpu.memory_space<vmem>>, %arg9: memref<1x128x256xf32, #tpu.memory_space<vmem>>, %arg10: memref<128x256xf32, #tpu.memory_space<vmem>>, %arg11: memref<128x1xf32, #tpu.memory_space<vmem>>, %arg12: memref<128x1xf32, #tpu.memory_space<vmem>>, %arg13: memref<128x64xf32, #tpu.memory_space<vmem>>) attributes {dimension_semantics = [#tpu.dimension_semantics<parallel>, #tpu.dimension_semantics<parallel>, #tpu.dimension_semantics<arbitrary>, #tpu.dimension_semantics<arbitrary>], iteration_bounds = array<i64: 2, 2, 4, 2>, scalar_prefetch = 0 : i64, scratch_operands = 4 : i64, tpu.core_type = #tpu.core_type<tc>, window_params = [{transform_indices = @transform_0, window_bounds = array<i64: 1, 1, 128, 64>}, {transform_indices = @transform_1, window_bounds = array<i64: 1, 1, 128, 64>}, {transform_indices = @transform_2, window_bounds = array<i64: 1, 1, 128, 64>}, {pipeline_mode = #tpu.pipeline_mode<synchronous>, transform_indices = @transform_3, window_bounds = array<i64: 4, 64, 256>}, {pipeline_mode = #tpu.pipeline_mode<synchronous>, transform_indices = @transform_4, window_bounds = array<i64: 1, 256>}, {transform_indices = @transform_5, window_bounds = array<i64: 1, 128, 256>}]} {
    %c0_i32 = arith.constant 0 : i32
    %0 = arith.cmpi eq, %arg3, %c0_i32 : i32
    %1 = arith.extui %0 : i1 to i32
    %c0_i32_0 = arith.constant 0 : i32
    %2 = arith.cmpi ne, %1, %c0_i32_0 : i32
    scf.if %2 {
      %cst_28 = arith.constant 0xFF800000 : f32
      %35 = vector.broadcast %cst_28 : f32 to vector<128x1xf32>
      %c0_29 = arith.constant 0 : index
      %c0_30 = arith.constant 0 : index
      %36 = vector.load %arg11[%c0_29, %c0_30] : memref<128x1xf32, #tpu.memory_space<vmem>>, vector<128x1xf32>
      tpu.vector_store %arg11[%c0_29, %c0_30], %35 {strides = array<i32>} : memref<128x1xf32, #tpu.memory_space<vmem>>, vector<128x1xf32>,
      %cst_31 = arith.constant 0.000000e+00 : f32
      %37 = vector.broadcast %cst_31 : f32 to vector<128x1xf32>
      %c0_32 = arith.constant 0 : index
      %c0_33 = arith.constant 0 : index
      %38 = vector.load %arg12[%c0_32, %c0_33] : memref<128x1xf32, #tpu.memory_space<vmem>>, vector<128x1xf32>
      tpu.vector_store %arg12[%c0_32, %c0_33], %37 {strides = array<i32>} : memref<128x1xf32, #tpu.memory_space<vmem>>, vector<128x1xf32>,
      %cst_34 = arith.constant 0.000000e+00 : f32
      %39 = vector.broadcast %cst_34 : f32 to vector<128x64xf32>
      %c0_35 = arith.constant 0 : index
      %c0_36 = arith.constant 0 : index
      %40 = vector.load %arg13[%c0_35, %c0_36] : memref<128x64xf32, #tpu.memory_space<vmem>>, vector<128x64xf32>
      tpu.vector_store %arg13[%c0_35, %c0_36], %39 {strides = array<i32>} : memref<128x64xf32, #tpu.memory_space<vmem>>, vector<128x64xf32>,
    } else {
    }
    %c0 = arith.constant 0 : index
    %c0_1 = arith.constant 0 : index
    %c0_2 = arith.constant 0 : index
    %c0_3 = arith.constant 0 : index
    %3 = vector.load %arg4[%c0, %c0_1, %c0_2, %c0_3] : memref<1x1x128x64xf32, #tpu.memory_space<vmem>>, vector<1x1x128x64xf32>
    %4 = vector.shape_cast %3 : vector<1x1x128x64xf32> to vector<128x64xf32>
    %c0_4 = arith.constant 0 : index
    %c0_5 = arith.constant 0 : index
    %c0_6 = arith.constant 0 : index
    %c0_7 = arith.constant 0 : index
    %5 = vector.load %arg5[%c0_4, %c0_5, %c0_6, %c0_7] : memref<1x1x128x64xf32, #tpu.memory_space<vmem>>, vector<1x1x128x64xf32>
    %6 = vector.shape_cast %5 : vector<1x1x128x64xf32> to vector<128x64xf32>
    %c0_8 = arith.constant 0 : index
    %c0_9 = arith.constant 0 : index
    %c0_10 = arith.constant 0 : index
    %c0_11 = arith.constant 0 : index
    %7 = vector.load %arg6[%c0_8, %c0_9, %c0_10, %c0_11] : memref<1x1x128x64xf32, #tpu.memory_space<vmem>>, vector<1x1x128x64xf32>
    %8 = vector.shape_cast %7 : vector<1x1x128x64xf32> to vector<128x64xf32>
    %cst = arith.constant dense<0.000000e+00> : vector<128x128xf32>
    %9 = tpu.matmul %4, %6, %cst {dimension_numbers = #tpu.dot_dimension_numbers<[1], [1], [0], [0], [0, 0, 1, 0], [], []>} : vector<128x64xf32>, vector<128x64xf32>, vector<128x128xf32> -> vector<128x128xf32>
    %c0_12 = arith.constant 0 : index
    %c0_13 = arith.constant 0 : index
    %10 = vector.load %arg11[%c0_12, %c0_13] : memref<128x1xf32, #tpu.memory_space<vmem>>, vector<128x1xf32>
    %cst_14 = arith.constant dense<0xFF800000> : vector<128xf32>
    %11 = vector.multi_reduction <maximumf>, %9, %cst_14 [1] : vector<128x128xf32> to vector<128xf32>
    %12 = vector.shape_cast %11 : vector<128xf32> to vector<128x1xf32>
    %13 = arith.maximumf %10, %12 : vector<128x1xf32>
    %14 = arith.subf %10, %13 : vector<128x1xf32>
    %15 = math.exp %14 : vector<128x1xf32>
    %16 = vector.broadcast %13 : vector<128x1xf32> to vector<128x128xf32>
    %17 = arith.subf %9, %16 : vector<128x128xf32>
    %18 = math.exp %17 : vector<128x128xf32>
    %c0_15 = arith.constant 0 : index
    %c0_16 = arith.constant 0 : index
    %19 = vector.load %arg12[%c0_15, %c0_16] : memref<128x1xf32, #tpu.memory_space<vmem>>, vector<128x1xf32>
    %20 = arith.mulf %15, %19 : vector<128x1xf32>
    %cst_17 = arith.constant dense<0.000000e+00> : vector<128xf32>
    %21 = vector.multi_reduction <add>, %18, %cst_17 [1] : vector<128x128xf32> to vector<128xf32>
    %22 = vector.shape_cast %21 : vector<128xf32> to vector<128x1xf32>
    %23 = arith.addf %20, %22 : vector<128x1xf32>
    %c0_18 = arith.constant 0 : index
    %c0_19 = arith.constant 0 : index
    %24 = vector.load %arg12[%c0_18, %c0_19] : memref<128x1xf32, #tpu.memory_space<vmem>>, vector<128x1xf32>
    tpu.vector_store %arg12[%c0_18, %c0_19], %23 {strides = array<i32>} : memref<128x1xf32, #tpu.memory_space<vmem>>, vector<128x1xf32>,
    %c0_20 = arith.constant 0 : index
    %c0_21 = arith.constant 0 : index
    %25 = vector.load %arg13[%c0_20, %c0_21] : memref<128x64xf32, #tpu.memory_space<vmem>>, vector<128x64xf32>
    %26 = vector.broadcast %15 : vector<128x1xf32> to vector<128x64xf32>
    %27 = arith.mulf %26, %25 : vector<128x64xf32>
    %cst_22 = arith.constant dense<0.000000e+00> : vector<128x64xf32>
    %28 = tpu.matmul %18, %8, %cst_22 {dimension_numbers = #tpu.dot_dimension_numbers<[1], [0], [0], [1], [0, 0, 1, 1], [], []>} : vector<128x128xf32>, vector<128x64xf32>, vector<128x64xf32> -> vector<128x64xf32>
    %29 = arith.addf %27, %28 : vector<128x64xf32>
    %c0_23 = arith.constant 0 : index
    %c0_24 = arith.constant 0 : index
    %30 = vector.load %arg13[%c0_23, %c0_24] : memref<128x64xf32, #tpu.memory_space<vmem>>, vector<128x64xf32>
    tpu.vector_store %arg13[%c0_23, %c0_24], %29 {strides = array<i32>} : memref<128x64xf32, #tpu.memory_space<vmem>>, vector<128x64xf32>,
    %c0_25 = arith.constant 0 : index
    %c0_26 = arith.constant 0 : index
    %31 = vector.load %arg11[%c0_25, %c0_26] : memref<128x1xf32, #tpu.memory_space<vmem>>, vector<128x1xf32>
    tpu.vector_store %arg11[%c0_25, %c0_26], %13 {strides = array<i32>} : memref<128x1xf32, #tpu.memory_space<vmem>>, vector<128x1xf32>,
    %c1_i32 = arith.constant 1 : i32
    %32 = arith.cmpi eq, %arg3, %c1_i32 : i32
    %33 = arith.extui %32 : i1 to i32
    %c0_i32_27 = arith.constant 0 : i32
    %34 = arith.cmpi ne, %33, %c0_i32_27 : i32
    scf.if %34 {
      %c0_28 = arith.constant 0 : index
      %c0_29 = arith.constant 0 : index
      %35 = vector.load %arg12[%c0_28, %c0_29] : memref<128x1xf32, #tpu.memory_space<vmem>>, vector<128x1xf32>
      %36 = tpu.reciprocal %35 {approx = true} : vector<128x1xf32> -> vector<128x1xf32>
      %c0_30 = arith.constant 0 : index
      %c0_31 = arith.constant 0 : index
      %37 = vector.load %arg13[%c0_30, %c0_31] : memref<128x64xf32, #tpu.memory_space<vmem>>, vector<128x64xf32>
      %38 = vector.broadcast %36 : vector<128x1xf32> to vector<128x64xf32>
      %39 = arith.mulf %37, %38 : vector<128x64xf32>
      %40 = arith.index_cast %arg2 : i32 to index
      %c0_32 = arith.constant 0 : index
      %c0_33 = arith.constant 0 : index
      %41 = vector.load %arg7[%40, %c0_32, %c0_33] : memref<4x64x256xf32, #tpu.memory_space<vmem>>, vector<1x64x256xf32>
      %42 = vector.shape_cast %41 : vector<1x64x256xf32> to vector<64x256xf32>
      %cst_34 = arith.constant dense<0.000000e+00> : vector<128x256xf32>
      %43 = tpu.matmul %39, %42, %cst_34 {dimension_numbers = #tpu.dot_dimension_numbers<[1], [0], [0], [1], [0, 0, 1, 1], [], []>} : vector<128x64xf32>, vector<64x256xf32>, vector<128x256xf32> -> vector<128x256xf32>
      %c0_i32_35 = arith.constant 0 : i32
      %44 = arith.cmpi eq, %arg2, %c0_i32_35 : i32
      %45 = arith.extui %44 : i1 to i32
      %c0_i32_36 = arith.constant 0 : i32
      %46 = arith.cmpi ne, %45, %c0_i32_36 : i32
      scf.if %46 {
        %c0_40 = arith.constant 0 : index
        %c0_41 = arith.constant 0 : index
        %53 = vector.load %arg8[%c0_40, %c0_41] : memref<1x256xf32, #tpu.memory_space<vmem>>, vector<1x256xf32>
        %54 = vector.broadcast %53 : vector<1x256xf32> to vector<128x256xf32>
        %55 = arith.addf %43, %54 : vector<128x256xf32>
        %c0_42 = arith.constant 0 : index
        %c0_43 = arith.constant 0 : index
        %56 = vector.load %arg10[%c0_42, %c0_43] : memref<128x256xf32, #tpu.memory_space<vmem>>, vector<128x256xf32>
        tpu.vector_store %arg10[%c0_42, %c0_43], %55 {strides = array<i32>} : memref<128x256xf32, #tpu.memory_space<vmem>>, vector<128x256xf32>,
      } else {
      }
      %c0_i32_37 = arith.constant 0 : i32
      %47 = arith.cmpi sgt, %arg2, %c0_i32_37 : i32
      %48 = arith.extui %47 : i1 to i32
      %c0_i32_38 = arith.constant 0 : i32
      %49 = arith.cmpi ne, %48, %c0_i32_38 : i32
      scf.if %49 {
        %c0_40 = arith.constant 0 : index
        %c0_41 = arith.constant 0 : index
        %53 = vector.load %arg10[%c0_40, %c0_41] : memref<128x256xf32, #tpu.memory_space<vmem>>, vector<128x256xf32>
        %54 = arith.addf %53, %43 : vector<128x256xf32>
        %c0_42 = arith.constant 0 : index
        %c0_43 = arith.constant 0 : index
        %55 = vector.load %arg10[%c0_42, %c0_43] : memref<128x256xf32, #tpu.memory_space<vmem>>, vector<128x256xf32>
        tpu.vector_store %arg10[%c0_42, %c0_43], %54 {strides = array<i32>} : memref<128x256xf32, #tpu.memory_space<vmem>>, vector<128x256xf32>,
      } else {
      }
      %c3_i32 = arith.constant 3 : i32
      %50 = arith.cmpi eq, %arg2, %c3_i32 : i32
      %51 = arith.extui %50 : i1 to i32
      %c0_i32_39 = arith.constant 0 : i32
      %52 = arith.cmpi ne, %51, %c0_i32_39 : i32
      scf.if %52 {
        %c0_40 = arith.constant 0 : index
        %c0_41 = arith.constant 0 : index
        %53 = vector.load %arg10[%c0_40, %c0_41] : memref<128x256xf32, #tpu.memory_space<vmem>>, vector<128x256xf32>
        %c0_42 = arith.constant 0 : index
        %c0_43 = arith.constant 0 : index
        %c0_44 = arith.constant 0 : index
        %54 = vector.load %arg9[%c0_42, %c0_43, %c0_44] : memref<1x128x256xf32, #tpu.memory_space<vmem>>, vector<1x128x256xf32>
        %55 = vector.shape_cast %54 : vector<1x128x256xf32> to vector<128x256xf32>
        %56 = vector.shape_cast %53 : vector<128x256xf32> to vector<1x128x256xf32>
        tpu.vector_store %arg9[%c0_42, %c0_43, %c0_44], %56 {strides = array<i32>} : memref<1x128x256xf32, #tpu.memory_space<vmem>>, vector<1x128x256xf32>,
      } else {
      }
    } else {
    }
    return
  }
  func.func @transform_0(%arg0: i32, %arg1: i32, %arg2: i32, %arg3: i32) -> (i32, i32, i32, i32) {
    %c0_i32 = arith.constant 0 : i32
    %c0_i32_0 = arith.constant 0 : i32
    return %arg0, %arg2, %arg1, %c0_i32 : i32, i32, i32, i32
  }
  func.func @transform_1(%arg0: i32, %arg1: i32, %arg2: i32, %arg3: i32) -> (i32, i32, i32, i32) {
    %c0_i32 = arith.constant 0 : i32
    %c0_i32_0 = arith.constant 0 : i32
    return %arg0, %arg2, %arg3, %c0_i32 : i32, i32, i32, i32
  }
  func.func @transform_2(%arg0: i32, %arg1: i32, %arg2: i32, %arg3: i32) -> (i32, i32, i32, i32) {
    %c0_i32 = arith.constant 0 : i32
    %c0_i32_0 = arith.constant 0 : i32
    return %arg0, %arg2, %arg3, %c0_i32 : i32, i32, i32, i32
  }
  func.func @transform_3(%arg0: i32, %arg1: i32, %arg2: i32, %arg3: i32) -> (i32, i32, i32) {
    %c0_i32 = arith.constant 0 : i32
    %c0_i32_0 = arith.constant 0 : i32
    %c0_i32_1 = arith.constant 0 : i32
    %c0_i32_2 = arith.constant 0 : i32
    return %c0_i32, %c0_i32_0, %c0_i32_1 : i32, i32, i32
  }
  func.func @transform_4(%arg0: i32, %arg1: i32, %arg2: i32, %arg3: i32) -> (i32, i32) {
    %c0_i32 = arith.constant 0 : i32
    %c0_i32_0 = arith.constant 0 : i32
    %c0_i32_1 = arith.constant 0 : i32
    return %c0_i32, %c0_i32_0 : i32, i32
  }
  func.func @transform_5(%arg0: i32, %arg1: i32, %arg2: i32, %arg3: i32) -> (i32, i32, i32) {
    %c0_i32 = arith.constant 0 : i32
    %c0_i32_0 = arith.constant 0 : i32
    return %arg0, %arg1, %c0_i32 : i32, i32, i32
  }
}

</mosaic_0001>

<bundles_post_ra>
// kernel: tpu_custom_call.1
= control target key start
LH: loop header
LB: loop body
LE: loop exit
PB: predicated region body
PF: predicated region fallthrough
CT: control target
= control target key end

     0   :  { %10 = vsyncpa [#allocation7], 0  ;;  %s3801_s0 = inlined_call_operand.vmem [shape: f32[2,4,256,64], index: 0, kind: input, shape index: {}]   ;;  %s3802_s1 = inlined_call_operand.vmem [shape: f32[2,4,256,64], index: 1, kind: input, shape index: {}]   ;;  %s3803_s2 = inlined_call_operand.vmem [shape: f32[2,4,256,64], index: 2, kind: input, shape index: {}]   ;;  %s3804_s3 = inlined_call_operand.vmem [shape: f32[4,64,256], index: 3, kind: input, shape index: {}]   ;;  %s3805_s4 = inlined_call_operand.vmem [shape: f32[1,256], index: 4, kind: input, shape index: {}]   ;;  %s3806_s5 = inlined_call_operand.hbm [shape: f32[2,256,256], index: 5, kind: output, shape index: {}]  }
   0x1   :  { %12 = vsyncpa [#allocation7 + $0x1], 0  ;;  %s2897_s18 = smov 0   ;;  %s2899_s19 = smov 0  }
   0x2   :  { %s2901_s20 = smov 0   ;;  %s2903_s21 = smov 0  }
   0x3   :  { %s2905_s22 = smov 0   ;;  %s2907_s23 = smov 0  }
   0x4   :  { %s2909_s24 = smov 0   ;;  %s2911_s25 = smov 0  }
   0x5   :  { %s2913_s26 = smov 0   ;;  %s2915_s27 = smov 0  }
   0x6   :  { %s2917_s28 = smov 0   ;;  %s2919_s29 = smov 0  }
   0x7 LB: > { %3819 = sst [smem:[#allocation9_spill]] %s2813_s18  ;;  %s2159_s30 = sadd.s32 4294967295, %s2857_s29   ;;  %s2857_s29 = sphi %s2919_s29, %s18_s29   ;;  %s2853_s28 = sphi %s2917_s28, %s3849_s28   ;;  %s2849_s27 = sphi %s2915_s27, %s3848_s27   ;;  %s2845_s26 = sphi %s2913_s26, %s3847_s26   ;;  %s2841_s25 = sphi %s2911_s25, %s3846_s25   ;;  %s2837_s24 = sphi %s2909_s24, %s3845_s24   ;;  %s2833_s23 = sphi %s2907_s23, %s3844_s23   ;;  %s2829_s22 = sphi %s2905_s22, %s3843_s22   ;;  %s2825_s21 = sphi %s2903_s21, %s3842_s21   ;;  %s2821_s20 = sphi %s2901_s20, %s3841_s20   ;;  %s2817_s19 = sphi %s2899_s19, %s3851_s19   ;;  %s2813_s18 = sphi %s2897_s18, %s3850_s18  }
   0x8   : > { %3820 = sst [smem:[#allocation10_spill]] %s2821_s20  ;;  %s2160_s6 = sadd.s32 4294967294, %s2857_s29  }
   0x9   : > { %3821 = sst [smem:[#allocation11_spill]] %s2841_s25  ;;  %s33_s7 = sadd.s32 1, %s2841_s25 }
   0xa   : > { %3822 = sst [smem:[#allocation12_spill]] %s2845_s26  ;;  %p34_p0 = scmp.ge.s32.totalorder %s33_s7, 2 }
   0xb   : > { %3823 = sst [smem:[#allocation13_spill]] %s2849_s27  ;;  %s36_s8 = sadd.s32 1, %s2845_s26 }
   0xc   : > { %3824 = sst [smem:[#allocation14_spill]] %s2853_s28  ;;  %s40_s9 = sadd.s32 1, %s2849_s27 }
   0xd   : > { %3825 = sst [smem:[#allocation15_spill]] %s2857_s29  ;;  %s44_s10 = sadd.s32 1, %s2853_s28 }
   0xe   : > { %s3853_s7 = smov (%p34_p0, %s33_s7), 0  ;;  %s3855_s8 = smov (!%p34_p0, %s36_s8), %s2845_s26 }
   0xf   : > { %3826 = sst [smem:[#allocation16_spill]] %s3853_s7  ;;  %p195_p1 = scmp.ne.s32.totalorder %s2821_s20, %s2817_s19 }
  0x10   : > { %p196_p2 = scmp.eq.s32.totalorder %s2159_s30, 31  ;;  %p38_p3 = scmp.ge.s32.totalorder %s3855_s8, 4 }
  0x11   : > { %p201_p4 = scmp.ne.s32.totalorder %s2817_s19, %s2813_s18  ;;  %p202_p6 = scmp.eq.s32.totalorder %s2160_s6, 31 }
  0x12   : > { %p2970_p5 = por %p196_p2, %p195_p1  ;;  %s3857_s8 = smov (%p38_p3, %s3855_s8), 0 }
  0x13   : > { %3828 = sst [smem:[#allocation17_spill]] %s3857_s8  ;;  %s3859_s9 = smov (!%p38_p3, %s40_s9), %s2849_s27 }
  0x14   : > { %p2977_p7 = por %p202_p6, %p201_p4  ;;  %p2163_p8 = scmp.ge.s32.totalorder %s2857_s29, 1 }
  0x15   : > { %p42_p9 = scmp.ge.s32.totalorder %s3859_s9, 2  ;;  %p277_p10 = scmp.lt.s32.totalorder %s2857_s29, 33 }
  0x16   : > { %s3829_s12 = scalar_select %p2977_p7, 1, 0 }
  0x17   : > { %s3861_s9 = smov (%p42_p9, %s3859_s9), 0  ;;  %s3863_s10 = smov (!%p42_p9, %s44_s10), %s2853_s28 }
  0x18   : > { %3830 = sst [smem:[#allocation18_spill]] %s3829_s12  ;;  %p278_p11 = pnand %p2163_p8, %p277_p10 }
  0x19   : > { %3831 = sst [smem:[#allocation19_spill]] %s3861_s9  ;;  %p46_p12 = scmp.ge.s32.totalorder %s3863_s10, 2 }
  0x1a   : > { %s181_s13 = ssub.s32 %s2849_s27, %s3861_s9  ;;  %s185_s16 = sadd.s32 1, %s2821_s20 }
  0x1b   : > { %s3865_s10 = smov (%p46_p12, %s3863_s10), 0  ;;  %s3813_s30 = sand.u32 (!%p278_p11), 1, %s2817_s19  }
  0x1c   : > { %3832 = sst [smem:[#allocation20_spill]] %s3865_s10  ;;  %s180_s14 = ssub.s32 %s2853_s28, %s3865_s10 }
  0x1d   : > { %s182_s15 = sor.u32 %s181_s13, %s180_s14  ;;  %281 = sbr.rel (%p278_p11) target bundleno = 1317 (0x525), region = 40 }
  0x1e   : > { %p183_p13 = scmp.eq.s32.totalorder %s182_s15, 0  ;;  %s2165_s6 = sshll.u32 (!%p278_p11), %s2833_s23, 4 }
  0x1f   : > { %s2164_s9 = sshll.u32 (!%p278_p11), %s3813_s30, 8  ;;  %p340_p0 = scmp.lt.s32.totalorder (!%p278_p11), %s2837_s24, 1 }
  0x20   : > { %s2994_s17 = scalar_select %p183_p13, %s2821_s20, %s185_s16  }
  0x21   : > { %p342_p1 = scmp.lt.s32.totalorder (!%p278_p11), %s2829_s22, 3  ;;  %p344_p2 = scmp.lt.s32.totalorder (!%p278_p11), %s2165_s6, 31 }
  0x22   : > { %3833 = sst [smem:[#allocation21_spill]] %s2994_s17  ;;  %s2169_s10 = sshll.u32 (!%p278_p11), %s2825_s21, 4 }
  0x23   : > { %p358_p3 = scmp.lt.s32.totalorder (!%p278_p11), %s2169_s10, 31  ;;  %p2177_p4 = scmp.ne.s32.totalorder (!%p278_p11), %s2825_s21, 0 }
  0x24   : > { %s341_s13 = scalar_select %p340_p0, %s2837_s24, 1 }
  0x25   : > { %s343_s14 = scalar_select %p342_p1, %s2829_s22, 3 }
  0x26   : > { %s2167_s15 = sshll.u32 %s341_s13, 7  ;;  %s3867_s6 = smov (!%p344_p2, %s2165_s6), 31  ;;  %vm386_vm0 = vcmask (!%p2177_p4), 7168   ;;  %vm419_vm1 = vcmask (!%p2177_p4), 523264   ;;  %v2859_v0 = vmov (!%p2177_p4), -inf   ;;  %v2860_v1 = vmov (!%p2177_p4), 0.0  }
  0x27   : > { %s2166_s16 = sshll.u32 %s343_s14, 5  ;;  %s3869_s10 = smov (!%p358_p3, %s2169_s10), 31  ;;  %387 = vst.msk [vmem:[#allocation3] sm:$0xff] (!%p2177_p4), %vm386_vm0, %v2859_v0  ;;  %388 = vst.msk [vmem:[#allocation3 + $0x8] sm:$0xff] (!%p2177_p4), %vm386_vm0, %v2859_v0 }
  0x28   : > { %s347_s8 = sadd.s32 %s2166_s16, %s3867_s6  ;;  %s361_s30 = sadd.s32 %s2166_s16, %s3869_s10  ;;  %389 = vst.msk [vmem:[#allocation3 + $0x10] sm:$0xff] (!%p2177_p4), %vm386_vm0, %v2859_v0  ;;  %390 = vst.msk [vmem:[#allocation3 + $0x18] sm:$0xff] (!%p2177_p4), %vm386_vm0, %v2859_v0 }
  0x29   : > { %s349_s7 = sadd.s32 %s2167_s15, %s347_s8  ;;  %s363_s17 = sadd.s32 %s2167_s15, %s361_s30  ;;  %391 = vst.msk [vmem:[#allocation3 + $0x20] sm:$0xff] (!%p2177_p4), %vm386_vm0, %v2859_v0  ;;  %392 = vst.msk [vmem:[#allocation3 + $0x28] sm:$0xff] (!%p2177_p4), %vm386_vm0, %v2859_v0 }
  0x2a   : > { %s2168_s28 = sshll.u32 %s349_s7, 3  ;;  %s2172_s20 = sshll.u32 %s363_s17, 3  ;;  %393 = vst.msk [vmem:[#allocation3 + $0x30] sm:$0xff] (!%p2177_p4), %vm386_vm0, %v2859_v0  ;;  %394 = vst.msk [vmem:[#allocation3 + $0x38] sm:$0xff] (!%p2177_p4), %vm386_vm0, %v2859_v0 }
  0x2b   : > { %s3008_s25 = scalar_lea.vmem %s3801_s0, %s2168_s28  ;;  %s3013_s13 = scalar_lea.vmem %s3802_s1, %s2172_s20  ;;  %395 = vst.msk [vmem:[#allocation3 + $0x40] sm:$0xff] (!%p2177_p4), %vm386_vm0, %v2859_v0  ;;  %396 = vst.msk [vmem:[#allocation3 + $0x48] sm:$0xff] (!%p2177_p4), %vm386_vm0, %v2859_v0 }
  0x2c   : > { %s3018_s6 = scalar_lea.vmem %s3803_s2, %s2172_s20  ;;  %s3020_s7 = scalar_lea.vmem [#allocation6], %s2164_s9  ;;  %397 = vst.msk [vmem:[#allocation3 + $0x50] sm:$0xff] (!%p2177_p4), %vm386_vm0, %v2859_v0  ;;  %398 = vst.msk [vmem:[#allocation3 + $0x58] sm:$0xff] (!%p2177_p4), %vm386_vm0, %v2859_v0 }
  0x2d   : > { %385 = sbr.rel (%p2177_p4) target bundleno = 63 (0x3f), region = 44  ;;  %399 = vst.msk [vmem:[#allocation3 + $0x60] sm:$0xff] (!%p2177_p4), %vm386_vm0, %v2859_v0  ;;  %400 = vst.msk [vmem:[#allocation3 + $0x68] sm:$0xff] (!%p2177_p4), %vm386_vm0, %v2859_v0 }
  0x2e   : > { %401 = vst.msk [vmem:[#allocation3 + $0x70] sm:$0xff] (!%p2177_p4), %vm386_vm0, %v2859_v0  ;;  %402 = vst.msk [vmem:[#allocation3 + $0x78] sm:$0xff] (!%p2177_p4), %vm386_vm0, %v2859_v0 }
  0x2f   : > { %403 = vst.msk [vmem:[#allocation4] sm:$0xff] (!%p2177_p4), %vm386_vm0, %v2860_v1  ;;  %404 = vst.msk [vmem:[#allocation4 + $0x8] sm:$0xff] (!%p2177_p4), %vm386_vm0, %v2860_v1 }
  0x30   : > { %405 = vst.msk [vmem:[#allocation4 + $0x10] sm:$0xff] (!%p2177_p4), %vm386_vm0, %v2860_v1  ;;  %406 = vst.msk [vmem:[#allocation4 + $0x18] sm:$0xff] (!%p2177_p4), %vm386_vm0, %v2860_v1 }
  0x31   : > { %407 = vst.msk [vmem:[#allocation4 + $0x20] sm:$0xff] (!%p2177_p4), %vm386_vm0, %v2860_v1  ;;  %408 = vst.msk [vmem:[#allocation4 + $0x28] sm:$0xff] (!%p2177_p4), %vm386_vm0, %v2860_v1 }
  0x32   : > { %409 = vst.msk [vmem:[#allocation4 + $0x30] sm:$0xff] (!%p2177_p4), %vm386_vm0, %v2860_v1  ;;  %410 = vst.msk [vmem:[#allocation4 + $0x38] sm:$0xff] (!%p2177_p4), %vm386_vm0, %v2860_v1 }
  0x33   : > { %411 = vst.msk [vmem:[#allocation4 + $0x40] sm:$0xff] (!%p2177_p4), %vm386_vm0, %v2860_v1  ;;  %412 = vst.msk [vmem:[#allocation4 + $0x48] sm:$0xff] (!%p2177_p4), %vm386_vm0, %v2860_v1 }
  0x34   : > { %413 = vst.msk [vmem:[#allocation4 + $0x50] sm:$0xff] %vm386_vm0, %v2860_v1  ;;  %414 = vst.msk [vmem:[#allocation4 + $0x58] sm:$0xff] %vm386_vm0, %v2860_v1 }
  0x35   : > { %415 = vst.msk [vmem:[#allocation4 + $0x60] sm:$0xff] %vm386_vm0, %v2860_v1  ;;  %416 = vst.msk [vmem:[#allocation4 + $0x68] sm:$0xff] %vm386_vm0, %v2860_v1 }
  0x36   : > { %417 = vst.msk [vmem:[#allocation4 + $0x70] sm:$0xff] %vm386_vm0, %v2860_v1  ;;  %418 = vst.msk [vmem:[#allocation4 + $0x78] sm:$0xff] %vm386_vm0, %v2860_v1 }
  0x37   : > { %420 = vst.msk [vmem:[#allocation5] sm:$0xff] %vm419_vm1, %v2860_v1  ;;  %421 = vst.msk [vmem:[#allocation5 + $0x8] sm:$0xff] %vm419_vm1, %v2860_v1 }
  0x38   : > { %422 = vst.msk [vmem:[#allocation5 + $0x10] sm:$0xff] %vm419_vm1, %v2860_v1  ;;  %423 = vst.msk [vmem:[#allocation5 + $0x18] sm:$0xff] %vm419_vm1, %v2860_v1 }
  0x39   : > { %424 = vst.msk [vmem:[#allocation5 + $0x20] sm:$0xff] %vm419_vm1, %v2860_v1  ;;  %425 = vst.msk [vmem:[#allocation5 + $0x28] sm:$0xff] %vm419_vm1, %v2860_v1 }
  0x3a   : > { %426 = vst.msk [vmem:[#allocation5 + $0x30] sm:$0xff] %vm419_vm1, %v2860_v1  ;;  %427 = vst.msk [vmem:[#allocation5 + $0x38] sm:$0xff] %vm419_vm1, %v2860_v1 }
  0x3b   : > { %428 = vst.msk [vmem:[#allocation5 + $0x40] sm:$0xff] %vm419_vm1, %v2860_v1  ;;  %429 = vst.msk [vmem:[#allocation5 + $0x48] sm:$0xff] %vm419_vm1, %v2860_v1 }
  0x3c   : > { %430 = vst.msk [vmem:[#allocation5 + $0x50] sm:$0xff] %vm419_vm1, %v2860_v1  ;;  %431 = vst.msk [vmem:[#allocation5 + $0x58] sm:$0xff] %vm419_vm1, %v2860_v1 }
  0x3d   : > { %432 = vst.msk [vmem:[#allocation5 + $0x60] sm:$0xff] %vm419_vm1, %v2860_v1  ;;  %433 = vst.msk [vmem:[#allocation5 + $0x68] sm:$0xff] %vm419_vm1, %v2860_v1 }
  0x3e   : > { %434 = vst.msk [vmem:[#allocation5 + $0x70] sm:$0xff] %vm419_vm1, %v2860_v1  ;;  %435 = vst.msk [vmem:[#allocation5 + $0x78] sm:$0xff] %vm419_vm1, %v2860_v1 }
  0x3f PF: > { %v452_v2 = vld [vmem:[%s3013_s13] sm:$0xff]  ;;  %v453_v3 = vld [vmem:[%s3013_s13 + $0x8] sm:$0xff]  ;;  %vm484_vm2 = vcmask 523264   ;;  %v454_v4 = vld [vmem:[%s3013_s13 + $0x10] sm:$0xff]  ;;  %v2861_v53 = vmov 0   ;;  %vm1046_vm4 = vcmask 7168  }
  0x40   : > { %v2417_v5 = vpack.c.bf16 %v453_v3, %v452_v2  ;;  %vm3076_vm3 = vmpackc.low %vm484_vm2, %vm484_vm2  ;;  %v455_v7 = vld [vmem:[%s3013_s13 + $0x18] sm:$0xff]  ;;  %v436_v9 = vld [vmem:[%s3008_s25] sm:$0xff]  ;;  %2631 = vset.pattern.permute.xlu0 %v2861_v53  ;;  %2632 = vset.pattern.permute.xlu1 %v2861_v53  ;;  %p2210_p6 = scmp.ne.s32.totalorder %s2825_s21, 1 }
  0x41   : > { %v2423_v8 = vpack.c.bf16 %v455_v7, %v454_v4  ;;  %v456_v10 = vld [vmem:[%s3013_s13 + $0x20] sm:$0xff]  ;;  %v457_v11 = vld [vmem:[%s3013_s13 + $0x28] sm:$0xff]  ;;  %2337 = vmatprep.mubr.msk.f32.mxu0 %vm484_vm2, %v436_v9  ;;  %v458_v13 = vld [vmem:[%s3013_s13 + $0x30] sm:$0xff]  ;;  %s2239_s18 = sshll.u32 (!%p2210_p6), %s2829_s22, 7  ;;  %p2229_p8 = scmp.ne.s32.totalorder (!%p2210_p6), %s2829_s22, 0 }
  0x42   : > { %2419 = vmatprep.subr.msk.bf16.mxu0 %vm3076_vm3, %v2417_v5  ;;  %v2429_v12 = vpack.c.bf16 %v457_v11, %v456_v10  ;;  %v459_v14 = vld [vmem:[%s3013_s13 + $0x38] sm:$0xff]  ;;  %v460_v16 = vld [vmem:[%s3013_s13 + $0x40] sm:$0xff]  ;;  %v461_v17 = vld [vmem:[%s3013_s13 + $0x48] sm:$0xff]  ;;  %s3509_s26 = scalar_lea.vmem (!%p2210_p6), %s3804_s3, %s2239_s18 }
  0x43   : > { %2422 = vmatpush3.bf16.xpose.msk.msra.mxu0 %vm3076_vm3, %v2417_v5  ;;  %v2435_v15 = vpack.c.bf16 %v459_v14, %v458_v13  ;;  %v2441_v18 = vpack.c.bf16 %v461_v17, %v460_v16  ;;  %v462_v19 = vld [vmem:[%s3013_s13 + $0x50] sm:$0xff]  ;;  %v463_v20 = vld [vmem:[%s3013_s13 + $0x58] sm:$0xff]  ;;  %v464_v22 = vld [vmem:[%s3013_s13 + $0x60] sm:$0xff] }
  0x44   : > { %2425 = vmatprep.subr.msk.bf16.mxu0 %vm3076_vm3, %v2423_v8  ;;  %v2447_v21 = vpack.c.bf16 %v463_v20, %v462_v19  ;;  %v465_v23 = vld [vmem:[%s3013_s13 + $0x68] sm:$0xff]  ;;  %v466_v25 = vld [vmem:[%s3013_s13 + $0x70] sm:$0xff]  ;;  %v467_v26 = vld [vmem:[%s3013_s13 + $0x78] sm:$0xff] }
  0x45   : > { %v2453_v24 = vpack.c.bf16 %v465_v23, %v464_v22  ;;  %v2459_v27 = vpack.c.bf16 %v467_v26, %v466_v25  ;;  %v437_v28 = vld [vmem:[%s3008_s25 + $0x8] sm:$0xff]  ;;  %v438_v29 = vld [vmem:[%s3008_s25 + $0x10] sm:$0xff]  ;;  %v439_v30 = vld [vmem:[%s3008_s25 + $0x18] sm:$0xff] }
  0x46   : > { %v440_v31 = vld [vmem:[%s3008_s25 + $0x20] sm:$0xff]  ;;  %v441_v32 = vld [vmem:[%s3008_s25 + $0x28] sm:$0xff]  ;;  %v442_v33 = vld [vmem:[%s3008_s25 + $0x30] sm:$0xff] }
  0x47   : > { %v443_v34 = vld [vmem:[%s3008_s25 + $0x38] sm:$0xff]  ;;  %v444_v35 = vld [vmem:[%s3008_s25 + $0x40] sm:$0xff]  ;;  %v445_v36 = vld [vmem:[%s3008_s25 + $0x48] sm:$0xff] }
  0x48   : > { %v446_v37 = vld [vmem:[%s3008_s25 + $0x50] sm:$0xff]  ;;  %v447_v38 = vld [vmem:[%s3008_s25 + $0x58] sm:$0xff]  ;;  %v448_v39 = vld [vmem:[%s3008_s25 + $0x60] sm:$0xff] }
  0x49   : > { %v449_v40 = vld [vmem:[%s3008_s25 + $0x68] sm:$0xff]  ;;  %v450_v41 = vld [vmem:[%s3008_s25 + $0x70] sm:$0xff]  ;;  %v451_v42 = vld [vmem:[%s3008_s25 + $0x78] sm:$0xff] }
  0x4a   : > { %v468_v60 = vld [vmem:[%s3018_s6] sm:$0xff]  ;;  %v469_v61 = vld [vmem:[%s3018_s6 + $0x8] sm:$0xff]  ;;  %v470_v62 = vld [vmem:[%s3018_s6 + $0x10] sm:$0xff] }
  0x4b   : > { %2428 = vmatpush3.bf16.xpose.msk.msra.mxu0 %vm3076_vm3, %v2423_v8  ;;  %v2465_v63 = vpack.c.bf16 %v469_v61, %v468_v60  ;;  %v471_v0 = vld [vmem:[%s3018_s6 + $0x18] sm:$0xff]  ;;  %v472_v2 = vld [vmem:[%s3018_s6 + $0x20] sm:$0xff]  ;;  %v473_v3 = vld [vmem:[%s3018_s6 + $0x28] sm:$0xff] }
  0x4c   : > { %2431 = vmatprep.subr.msk.bf16.mxu0 %vm3076_vm3, %v2429_v12  ;;  %v2469_v1 = vpack.c.bf16 %v471_v0, %v470_v62  ;;  %v2473_v4 = vpack.c.bf16 %v473_v3, %v472_v2  ;;  %v474_v5 = vld [vmem:[%s3018_s6 + $0x30] sm:$0xff]  ;;  %v475_v6 = vld [vmem:[%s3018_s6 + $0x38] sm:$0xff]  ;;  %v3213_v8 = vld [vmem:[#allocation3] sm:$0xff] }
  0x4d   : > { %2466 = vmatprep.subr.bf16.mxu1 %v2465_v63  ;;  %v2477_v7 = vpack.c.bf16 %v475_v6, %v474_v5  ;;  %v3218_v11 = vld [vmem:[#allocation3 + $0x18] sm:$0xff]  ;;  %v476_v14 = vld [vmem:[%s3018_s6 + $0x40] sm:$0xff]  ;;  %v3233_v20 = vld [vmem:[#allocation3 + $0x10] sm:$0xff] }
  0x4e   : > { %2468 = vmatpush3.bf16.msra.mxu1 %v2465_v63  ;;  %v478_v23 = vld [vmem:[%s3018_s6 + $0x50] sm:$0xff]  ;;  %v735_v62 = vld [vmem:[#allocation3 + $0x48] sm:$0xff]  ;;  %v737_v5 = vld [vmem:[#allocation3 + $0x58] sm:$0xff] }
  0x4f   : > { %2470 = vmatprep.subr.bf16.mxu1 %v2469_v1  ;;  %v3280_v0 = vld [vmem:[#allocation3 + $0x50] sm:$0xff] }
  0x52   : > { %2472 = vmatpush3.bf16.msra.mxu1 %v2469_v1 }
  0x53   : > { %2434 = vmatpush3.bf16.xpose.msk.msra.mxu0 %vm3076_vm3, %v2429_v12  ;;  %2474 = vmatprep.subr.bf16.mxu1 %v2473_v4  ;;  %v3220_v12 = vld [vmem:[#allocation3 + $0x8] sm:$0xff] }
  0x54   : > { %2437 = vmatprep.subr.msk.bf16.mxu0 %vm3076_vm3, %v2435_v15 }
  0x56   : > { %2476 = vmatpush3.bf16.msra.mxu1 %v2473_v4 }
  0x57   : > { %2478 = vmatprep.subr.bf16.mxu1 %v2477_v7 }
  0x5a   : > { %2480 = vmatpush3.bf16.msra.mxu1 %v2477_v7  ;;  %v3290_v7 = vld [vmem:[#allocation3 + $0x60] sm:$0xff] }
  0x5b   : > { %2440 = vmatpush3.bf16.xpose.msk.msra.mxu0 %vm3076_vm3, %v2435_v15  ;;  %v477_v15 = vld [vmem:[%s3018_s6 + $0x48] sm:$0xff] }
  0x5c   : > { %2443 = vmatprep.subr.msk.bf16.mxu0 %vm3076_vm3, %v2441_v18 }
  0x63   : > { %2446 = vmatpush3.bf16.xpose.msk.msra.mxu0 %vm3076_vm3, %v2441_v18  ;;  %v2481_v18 = vpack.c.bf16 %v477_v15, %v476_v14  ;;  %v739_v15 = vld [vmem:[#allocation3 + $0x68] sm:$0xff] }
  0x64   : > { %2449 = vmatprep.subr.msk.bf16.mxu0 %vm3076_vm3, %v2447_v21 }
  0x65   : > { %2482 = vmatprep.subr.bf16.mxu1 %v2481_v18 }
  0x66   : > { %2484 = vmatpush3.bf16.msra.mxu1 %v2481_v18  ;;  %v3301_v18 = vld [vmem:[#allocation3 + $0x70] sm:$0xff] }
  0x6b   : > { %2452 = vmatpush3.bf16.xpose.msk.msra.mxu0 %vm3076_vm3, %v2447_v21  ;;  %v3237_v21 = vld [vmem:[#allocation3 + $0x20] sm:$0xff] }
  0x6c   : > { %2455 = vmatprep.subr.msk.bf16.mxu0 %vm3076_vm3, %v2453_v24 }
  0x73   : > { %2458 = vmatpush3.bf16.xpose.msk.msra.mxu0 %vm3076_vm3, %v2453_v24  ;;  %v479_v24 = vld [vmem:[%s3018_s6 + $0x58] sm:$0xff] }
  0x74   : > { %2461 = vmatprep.subr.msk.bf16.mxu0 %vm3076_vm3, %v2459_v27 }
  0x7b   : > { %2464 = vmatpush3.bf16.xpose.msk.msra.mxu0 %vm3076_vm3, %v2459_v27  ;;  %v2485_v27 = vpack.c.bf16 %v479_v24, %v478_v23 }
  0x7d   : > { %2486 = vmatprep.subr.bf16.mxu1 %v2485_v27 }
  0x7e   : > { %2488 = vmatpush3.bf16.msra.mxu1 %v2485_v27 }
  0x82   : > { %2338 = vmatmul.mubr.msk.f32.vlgmr.msra.gmra.mrb[0].mxu0 %vm484_vm2, %v437_v28  ;;  %v3247_v28 = vld [vmem:[#allocation3 + $0x28] sm:$0xff] }
  0x83   : > { %2340 = vmatprep.mubr.msk.f32.mxu0 %vm484_vm2, %v438_v29 }
  0x86   : > { %2341 = vmatmul.mubr.msk.f32.gmra.mrb[2].mxu0 %vm484_vm2, %v439_v30  ;;  %v3254_v30 = vld [vmem:[#allocation3 + $0x30] sm:$0xff] }
  0x87   : > { %2343 = vmatprep.mubr.msk.f32.mxu0 %vm484_vm2, %v440_v31 }
  0x8a   : > { %2344 = vmatmul.mubr.msk.f32.gmra.mrb[4].mxu0 %vm484_vm2, %v441_v32  ;;  %v480_v32 = vld [vmem:[%s3018_s6 + $0x60] sm:$0xff] }
  0x8b   : > { %2346 = vmatprep.mubr.msk.f32.mxu0 %vm484_vm2, %v442_v33  ;;  %v481_v33 = vld [vmem:[%s3018_s6 + $0x68] sm:$0xff] }
  0x8e   : > { %2347 = vmatmul.mubr.msk.f32.gmra.mrb[6].mxu0 %vm484_vm2, %v443_v34 }
  0x8f   : > { %2349 = vmatprep.mubr.msk.f32.mxu0 %vm484_vm2, %v444_v35 }
  0x92   : > { %2350 = vmatmul.mubr.msk.f32.gmra.mrb[8].mxu0 %vm484_vm2, %v445_v36  ;;  %v2489_v36 = vpack.c.bf16 %v481_v33, %v480_v32 }
  0x93   : > { %2352 = vmatprep.mubr.msk.f32.mxu0 %vm484_vm2, %v446_v37  ;;  %v3262_v37 = vld [vmem:[#allocation3 + $0x38] sm:$0xff] }
  0x94   : > { %2490 = vmatprep.subr.bf16.mxu1 %v2489_v36 }
  0x95   : > { %2492 = vmatpush3.bf16.msra.mxu1 %v2489_v36 }
  0x96   : > { %2353 = vmatmul.mubr.msk.f32.gmra.mrb[10].mxu0 %vm484_vm2, %v447_v38 }
  0x97   : > { %2355 = vmatprep.mubr.msk.f32.mxu0 %vm484_vm2, %v448_v39  ;;  %v3268_v39 = vld [vmem:[#allocation3 + $0x40] sm:$0xff] }
  0x9a   : > { %2356 = vmatmul.mubr.msk.f32.gmra.mrb[12].mxu0 %vm484_vm2, %v449_v40 }
  0x9b   : > { %2358 = vmatprep.mubr.msk.f32.mxu0 %vm484_vm2, %v450_v41  ;;  %v482_v41 = vld [vmem:[%s3018_s6 + $0x70] sm:$0xff] }
  0x9e   : > { %2359 = vmatmul.mubr.msk.f32.gmra.mrb[14].mxu0 %vm484_vm2, %v451_v42  ;;  %v483_v42 = vld [vmem:[%s3018_s6 + $0x78] sm:$0xff] }
  0x9f   : > { %v2493_v61 = vpack.c.bf16 %v483_v42, %v482_v41 }
  0xa1   : > { %2494 = vmatprep.subr.bf16.mxu1 %v2493_v61 }
  0xa2   : > { %2496 = vmatpush3.bf16.msra.mxu1 %v2493_v61 }
 0x155   : > { %v3157_v43 = vpop.f32.mrb[0].mxu0 }
 0x156   : > { %v3159_v44 = vpop.f32.mrb[1].mxu0 }
 0x157   : > { %742 = vmax.xlane.f32.xlu0 %v3159_v44 }
 0x159   : > { %v3162_v45 = vpop.f32.mrb[2].mxu0 }
 0x15a   : > { %748 = vmax.xlane.f32.xlu1 %v3162_v45  ;;  %v3165_v46 = vpop.f32.mrb[3].mxu0 }
 0x15b   : > { %744 = vmax.xlane.f32.xlu0 %v3157_v43 }
 0x15d   : > { %v3168_v47 = vpop.f32.mrb[4].mxu0 }
 0x15e   : > { %746 = vmax.xlane.f32.xlu1 %v3165_v46  ;;  %v3171_v48 = vpop.f32.mrb[5].mxu0 }
 0x15f   : > { %750 = vmax.xlane.f32.xlu0 %v3171_v48 }
 0x161   : > { %v3174_v49 = vpop.f32.mrb[6].mxu0 }
 0x162   : > { %752 = vmax.xlane.f32.xlu1 %v3168_v47  ;;  %v3177_v50 = vpop.f32.mrb[7].mxu0 }
 0x163   : > { %754 = vmax.xlane.f32.xlu0 %v3177_v50 }
 0x165   : > { %v3180_v51 = vpop.f32.mrb[8].mxu0 }
 0x166   : > { %756 = vmax.xlane.f32.xlu1 %v3174_v49  ;;  %v3183_v52 = vpop.f32.mrb[9].mxu0 }
 0x167   : > { %758 = vmax.xlane.f32.xlu0 %v3183_v52 }
 0x169   : > { %v3186_v54 = vpop.f32.mrb[10].mxu0 }
 0x16a   : > { %760 = vmax.xlane.f32.xlu1 %v3180_v51  ;;  %v3189_v55 = vpop.f32.mrb[11].mxu0 }
 0x16b   : > { %762 = vmax.xlane.f32.xlu0 %v3189_v55 }
 0x16d   : > { %v3192_v56 = vpop.f32.mrb[12].mxu0 }
 0x16e   : > { %764 = vmax.xlane.f32.xlu1 %v3186_v54  ;;  %v3195_v57 = vpop.f32.mrb[13].mxu0 }
 0x16f   : > { %766 = vmax.xlane.f32.xlu0 %v3195_v57 }
 0x171   : > { %v3198_v58 = vpop.f32.mrb[14].mxu0 }
 0x172   : > { %768 = vmax.xlane.f32.xlu1 %v3192_v56  ;;  %v3201_v59 = vpop.f32.mrb[15].mxu0 }
 0x173   : > { %770 = vmax.xlane.f32.xlu0 %v3201_v59 }
 0x176   : > { %772 = vmax.xlane.f32.xlu1 %v3198_v58 }
 0x1e4   : > { %v743_v9 = vpop.xlane.xlu0 %742 }
 0x1e5   : > { %v3216_v10 = vmax.f32 %v3213_v8, %v743_v9 }
 0x1e7   : > { %1352 = vst.msk [vmem:[#allocation3] sm:$0xff] %vm1046_vm4, %v3216_v10  ;;  %v749_v13 = vpop.xlane.xlu1 %748  ;;  %840 = vperm.xlu0 %2631, %v3216_v10   ;;  %v790_v1 = vsub.f32 %v3213_v8, %v3216_v10 }
 0x1e8   : > { %v3228_v16 = vmax.f32 %v3218_v11, %v749_v13  ;;  %v745_v17 = vpop.xlane.xlu0 %744 }
 0x1e9   : > { %v3231_v19 = vmax.f32 %v3220_v12, %v745_v17  ;;  %v806_v9 = vmul.f32 1.442695, %v790_v1 }
 0x1ea   : > { %1355 = vst.msk [vmem:[#allocation3 + $0x18] sm:$0xff] %vm1046_vm4, %v3228_v16  ;;  %v793_v8 = vsub.f32 %v3218_v11, %v3228_v16 }
 0x1eb   : > { %1353 = vst.msk [vmem:[#allocation3 + $0x8] sm:$0xff] %vm1046_vm4, %v3231_v19  ;;  %v747_v22 = vpop.xlane.xlu1 %746  ;;  %845 = vperm.xlu1 %2632, %v3231_v19   ;;  %2633 = vpow2.f32 %v806_v9 }
 0x1ec   : > { %v3245_v25 = vmax.f32 %v3233_v20, %v747_v22  ;;  %v751_v26 = vpop.xlane.xlu0 %750  ;;  %v812_v22 = vmul.f32 1.442695, %v793_v8 }
 0x1ed   : > { %v3250_v29 = vmax.f32 %v3237_v21, %v751_v26  ;;  %v3306_v26 = vld [vmem:[#allocation3 + $0x78] sm:$0xff] }
 0x1ee   : > { %1354 = vst.msk [vmem:[#allocation3 + $0x10] sm:$0xff] %vm1046_vm4, %v3245_v25  ;;  %2635 = vpow2.f32 %v812_v22 }
 0x1ef   : > { %v753_v31 = vpop.xlane.xlu1 %752  ;;  %855 = vperm.xlu1 %2632, %v3228_v16   ;;  %1356 = vst.msk [vmem:[#allocation3 + $0x20] sm:$0xff] %vm1046_vm4, %v3250_v29  ;;  %v794_v61 = vsub.f32 %v3237_v21, %v3250_v29 }
 0x1f0   : > { %v779_v34 = vmax.f32 %v3247_v28, %v753_v31  ;;  %v755_v35 = vpop.xlane.xlu0 %754 }
 0x1f1   : > { %v3265_v38 = vmax.f32 %v3254_v30, %v755_v35  ;;  %v814_v1 = vmul.f32 1.442695, %v794_v61 }
 0x1f2   : > { %1357 = vst.msk [vmem:[#allocation3 + $0x28] sm:$0xff] %vm1046_vm4, %v779_v34  ;;  %v795_v11 = vsub.f32 %v3247_v28, %v779_v34 }
 0x1f3   : > { %v757_v40 = vpop.xlane.xlu1 %756  ;;  %850 = vperm.xlu1 %2632, %v3245_v25   ;;  %1358 = vst.msk [vmem:[#allocation3 + $0x30] sm:$0xff] %vm1046_vm4, %v3265_v38 }
 0x1f4   : > { %v781_v53 = vmax.f32 %v3262_v37, %v757_v40  ;;  %v759_v60 = vpop.xlane.xlu0 %758  ;;  %v816_v31 = vmul.f32 1.442695, %v795_v11 }
 0x1f5   : > { %v3277_v63 = vmax.f32 %v3268_v39, %v759_v60 }
 0x1f6   : > { %1359 = vst.msk [vmem:[#allocation3 + $0x38] sm:$0xff] %vm1046_vm4, %v781_v53  ;;  %v797_v32 = vsub.f32 %v3262_v37, %v781_v53  ;;  %2637 = vpow2.f32 %v816_v31 }
 0x1f7   : > { %v761_v2 = vpop.xlane.xlu1 %760  ;;  %865 = vperm.xlu1 %2632, %v779_v34   ;;  %1360 = vst.msk [vmem:[#allocation3 + $0x40] sm:$0xff] %vm1046_vm4, %v3277_v63  ;;  %v791_v34 = vsub.f32 %v3220_v12, %v3231_v19  ;;  %v792_v12 = vsub.f32 %v3233_v20, %v3245_v25  ;;  %v3331_v19 = vpop.eup %2633 }
 0x1f8   : > { %v783_v3 = vmax.f32 %v735_v62, %v761_v2  ;;  %v763_v4 = vpop.xlane.xlu0 %762  ;;  %v820_v37 = vmul.f32 1.442695, %v797_v32  ;;  %v796_v2 = vsub.f32 %v3254_v30, %v3265_v38 }
 0x1f9   : > { %v3287_v6 = vmax.f32 %v3280_v0, %v763_v4  ;;  %v808_v41 = vmul.f32 1.442695, %v791_v34  ;;  %v810_v60 = vmul.f32 1.442695, %v792_v12  ;;  %v798_v4 = vsub.f32 %v3268_v39, %v3277_v63 }
 0x1fa   : > { %1361 = vst.msk [vmem:[#allocation3 + $0x48] sm:$0xff] %vm1046_vm4, %v783_v3  ;;  %885 = vperm.xlu0 %2631, %v783_v3   ;;  %v799_v40 = vsub.f32 %v735_v62, %v783_v3  ;;  %2639 = vpow2.f32 %v820_v37  ;;  %v3337_v62 = vpop.eup %2635 }
 0x1fb   : > { %v765_v10 = vpop.xlane.xlu1 %764  ;;  %860 = vperm.xlu1 %2632, %v3250_v29   ;;  %1362 = vst.msk [vmem:[#allocation3 + $0x50] sm:$0xff] %vm1046_vm4, %v3287_v6  ;;  %2641 = vpow2.f32 %v808_v41  ;;  %v818_v29 = vmul.f32 1.442695, %v796_v2  ;;  %v822_v30 = vmul.f32 1.442695, %v798_v4 }
 0x1fc   : > { %v785_v13 = vmax.f32 %v737_v5, %v765_v10  ;;  %v767_v14 = vpop.xlane.xlu0 %766  ;;  %v824_v42 = vmul.f32 1.442695, %v799_v40 }
 0x1fd   : > { %v3298_v17 = vmax.f32 %v3290_v7, %v767_v14 }
 0x1fe   : > { %1363 = vst.msk [vmem:[#allocation3 + $0x58] sm:$0xff] %vm1046_vm4, %v785_v13  ;;  %895 = vperm.xlu0 %2631, %v785_v13   ;;  %2643 = vpow2.f32 %v824_v42 }
 0x1ff   : > { %v769_v16 = vpop.xlane.xlu1 %768  ;;  %875 = vperm.xlu1 %2632, %v781_v53   ;;  %1364 = vst.msk [vmem:[#allocation3 + $0x60] sm:$0xff] %vm1046_vm4, %v3298_v17  ;;  %v801_v53 = vsub.f32 %v737_v5, %v785_v13  ;;  %2645 = vpow2.f32 %v810_v60 }
 0x200   : > { %v787_v23 = vmax.f32 %v739_v15, %v769_v16  ;;  %v771_v24 = vpop.xlane.xlu0 %770  ;;  %v3343_v3 = vpop.eup %2637 }
 0x201   : > { %v3309_v27 = vmax.f32 %v3301_v18, %v771_v24  ;;  %v828_v20 = vmul.f32 1.442695, %v801_v53 }
 0x202   : > { %1365 = vst.msk [vmem:[#allocation3 + $0x68] sm:$0xff] %vm1046_vm4, %v787_v23  ;;  %905 = vperm.xlu0 %2631, %v787_v23   ;;  %v803_v25 = vsub.f32 %v739_v15, %v787_v23 }
 0x203   : > { %870 = vperm.xlu1 %2632, %v3265_v38   ;;  %v773_v28 = vpop.xlane.xlu1 %772  ;;  %v804_v33 = vsub.f32 %v3301_v18, %v3309_v27  ;;  %1366 = vst.msk [vmem:[#allocation3 + $0x70] sm:$0xff] %vm1046_vm4, %v3309_v27  ;;  %2647 = vpow2.f32 %v828_v20  ;;  %v800_v38 = vsub.f32 %v3280_v0, %v3287_v6 }
 0x204   : > { %v3321_v35 = vmax.f32 %v3306_v26, %v773_v28  ;;  %v832_v21 = vmul.f32 1.442695, %v803_v25  ;;  %2649 = vpow2.f32 %v814_v1  ;;  %v3349_v5 = vpop.eup %2639 }
 0x205   : > { %v3351_v9 = vpop.eup %2641  ;;  %v826_v39 = vmul.f32 1.442695, %v800_v38 }
 0x206   : > { %v805_v36 = vsub.f32 %v3306_v26, %v3321_v35  ;;  %1367 = vst.msk [vmem:[#allocation3 + $0x78] sm:$0xff] %vm1046_vm4, %v3321_v35  ;;  %915 = vperm.xlu0 %2631, %v3321_v35   ;;  %2651 = vpow2.f32 %v832_v21 }
 0x207   : > { %880 = vperm.xlu1 %2632, %v3277_v63   ;;  %2653 = vpow2.f32 %v818_v29  ;;  %v802_v63 = vsub.f32 %v3290_v7, %v3298_v17 }
 0x208   : > { %v3357_v8 = vpop.eup %2643  ;;  %2655 = vpow2.f32 %v822_v30 }
 0x209   : > { %v3359_v10 = vpop.eup %2645  ;;  %2657 = vpow2.f32 %v826_v39  ;;  %v830_v0 = vmul.f32 1.442695, %v802_v63 }
 0x20a   : > { %1081 = vperm.xlu0 %2631, %v3331_v19  }
 0x20b   : > { %890 = vperm.xlu1 %2632, %v3287_v6   ;;  %2659 = vpow2.f32 %v830_v0 }
 0x20d   : > { %v3365_v13 = vpop.eup %2647 }
 0x20e   : > { %1096 = vperm.xlu0 %2631, %v3337_v62   ;;  %v3367_v14 = vpop.eup %2649 }
 0x20f   : > { %900 = vperm.xlu1 %2632, %v3298_v17  }
 0x210   : > { %v3371_v6 = vpop.eup %2651 }
 0x211   : > { %v3373_v15 = vpop.eup %2653 }
 0x212   : > { %1106 = vperm.xlu0 %2631, %v3343_v3   ;;  %v3377_v7 = vpop.eup %2655 }
 0x213   : > { %910 = vperm.xlu1 %2632, %v3309_v27   ;;  %v3380_v17 = vpop.eup %2657 }
 0x215   : > { %v3383_v22 = vpop.eup %2659 }
 0x216   : > { %1116 = vperm.xlu0 %2631, %v3349_v5  }
 0x217   : > { %1086 = vperm.xlu1 %2632, %v3351_v9  }
 0x21a   : > { %1126 = vperm.xlu0 %2631, %v3357_v8  }
 0x21b   : > { %1091 = vperm.xlu1 %2632, %v3359_v10  }
 0x21e   : > { %1136 = vperm.xlu0 %2631, %v3365_v13  }
 0x21f   : > { %1101 = vperm.xlu1 %2632, %v3367_v14  }
 0x222   : > { %1146 = vperm.xlu0 %2631, %v3371_v6  }
 0x223   : > { %1111 = vperm.xlu1 %2632, %v3373_v15  }
 0x227   : > { %1121 = vperm.xlu1 %2632, %v3377_v7  }
 0x22b   : > { %1131 = vperm.xlu1 %2632, %v3380_v17  }
 0x22f   : > { %1141 = vperm.xlu1 %2632, %v3383_v22  }
 0x266   : > { %v841_v11 = vpop.permute.xlu0 %840 }
 0x267   : > { %v918_v16 = vsub.f32 %v3159_v44, %v841_v11 }
 0x269   : > { %v934_v23 = vmul.f32 1.442695, %v918_v16 }
 0x26a   : > { %v846_v24 = vpop.permute.xlu1 %845 }
 0x26b   : > { %2661 = vpow2.f32 %v934_v23  ;;  %v919_v31 = vsub.f32 %v3157_v43, %v846_v24 }
 0x26d   : > { %v936_v32 = vmul.f32 1.442695, %v919_v31 }
 0x26e   : > { %v856_v28 = vpop.permute.xlu1 %855 }
 0x26f   : > { %2663 = vpow2.f32 %v936_v32  ;;  %v921_v34 = vsub.f32 %v3162_v45, %v856_v28 }
 0x271   : > { %v940_v37 = vmul.f32 1.442695, %v921_v34 }
 0x272   : > { %v851_v40 = vpop.permute.xlu1 %850 }
 0x273   : > { %2665 = vpow2.f32 %v940_v37  ;;  %v920_v41 = vsub.f32 %v3165_v46, %v851_v40 }
 0x275   : > { %v2662_v12 = vpop.eup %2661  ;;  %v938_v42 = vmul.f32 1.442695, %v920_v41 }
 0x276   : > { %v866_v53 = vpop.permute.xlu1 %865  ;;  %998 = vadd.xlane.f32.xlu1 %v2662_v12  ;;  %2393 = vmatprep.mubr.f32.mxu1 %v2662_v12 }
 0x277   : > { %2667 = vpow2.f32 %v938_v42  ;;  %v923_v44 = vsub.f32 %v3168_v47, %v866_v53 }
 0x279   : > { %v2664_v60 = vpop.eup %2663  ;;  %v944_v43 = vmul.f32 1.442695, %v923_v44  ;;  %v886_v61 = vpop.permute.xlu0 %885 }
 0x27a   : > { %v861_v20 = vpop.permute.xlu1 %860  ;;  %1000 = vadd.xlane.f32.xlu0 %v2664_v60  ;;  %2394 = vmatmul.mubr.f32.vlgmr.msra.gmra.mrb[0].mxu1 %v2664_v60  ;;  %v927_v29 = vsub.f32 %v3180_v51, %v886_v61 }
 0x27b   : > { %2669 = vpow2.f32 %v944_v43  ;;  %v922_v45 = vsub.f32 %v3171_v48, %v861_v20 }
 0x27c   : > { %v952_v48 = vmul.f32 1.442695, %v927_v29 }
 0x27d   : > { %v2666_v25 = vpop.eup %2665  ;;  %v942_v1 = vmul.f32 1.442695, %v922_v45  ;;  %v896_v46 = vpop.permute.xlu0 %895 }
 0x27e   : > { %v876_v2 = vpop.permute.xlu1 %875  ;;  %1004 = vadd.xlane.f32.xlu1 %v2666_v25  ;;  %v929_v63 = vsub.f32 %v3186_v54, %v896_v46 }
 0x27f   : > { %2671 = vpow2.f32 %v942_v1  ;;  %v925_v21 = vsub.f32 %v3174_v49, %v876_v2  ;;  %v836_v1 = vmul.f32 1.442695, %v805_v36 }
 0x280   : > { %v956_v51 = vmul.f32 1.442695, %v929_v63 }
 0x281   : > { %v2668_v47 = vpop.eup %2667  ;;  %v948_v4 = vmul.f32 1.442695, %v925_v21  ;;  %v906_v38 = vpop.permute.xlu0 %905 }
 0x282   : > { %v871_v30 = vpop.permute.xlu1 %870  ;;  %1002 = vadd.xlane.f32.xlu0 %v2668_v47  ;;  %2396 = vmatprep.mubr.f32.mxu1 %v2668_v47  ;;  %v931_v23 = vsub.f32 %v3192_v56, %v906_v38 }
 0x283   : > { %2673 = vpow2.f32 %v948_v4  ;;  %v924_v39 = vsub.f32 %v3177_v50, %v871_v30  ;;  %2397 = vmatmul.mubr.f32.gmra.mrb[2].mxu1 %v2666_v25  ;;  %v834_v25 = vmul.f32 1.442695, %v804_v33 }
 0x284   : > { %v960_v54 = vmul.f32 1.442695, %v931_v23 }
 0x285   : > { %v2670_v0 = vpop.eup %2669  ;;  %v946_v11 = vmul.f32 1.442695, %v924_v39  ;;  %v916_v31 = vpop.permute.xlu0 %915 }
 0x286   : > { %v881_v16 = vpop.permute.xlu1 %880  ;;  %1008 = vadd.xlane.f32.xlu1 %v2670_v0  ;;  %v933_v34 = vsub.f32 %v3198_v58, %v916_v31 }
 0x287   : > { %2675 = vpow2.f32 %v946_v11  ;;  %v926_v49 = vsub.f32 %v3183_v52, %v881_v16  ;;  %v967_v16 = vld [vmem:[#allocation4 + $0x8] sm:$0xff] }
 0x288   : > { %2677 = vpow2.f32 %v952_v48  ;;  %v964_v41 = vmul.f32 1.442695, %v933_v34  ;;  %v966_v48 = vld [vmem:[#allocation4] sm:$0xff] }
 0x289   : > { %v2672_v24 = vpop.eup %2671  ;;  %v950_v32 = vmul.f32 1.442695, %v926_v49  ;;  %v3416_v18 = vpop.permute.xlu0 %1081  ;;  %v982_v63 = vmul.f32 %v3331_v19, %v966_v48  ;;  %v976_v48 = vld [vmem:[#allocation4 + $0x50] sm:$0xff] }
 0x28a   : > { %v891_v28 = vpop.permute.xlu1 %890  ;;  %1006 = vadd.xlane.f32.xlu0 %v2672_v24  ;;  %2399 = vmatprep.mubr.f32.mxu1 %v2672_v24  ;;  %v969_v24 = vld [vmem:[#allocation4 + $0x18] sm:$0xff] }
 0x28b   : > { %2679 = vpow2.f32 %v950_v32  ;;  %v928_v50 = vsub.f32 %v3189_v55, %v891_v28  ;;  %2400 = vmatmul.mubr.f32.gmra.mrb[4].mxu1 %v2670_v0  ;;  %v985_v32 = vmul.f32 %v3337_v62, %v969_v24 }
 0x28c   : > { %2681 = vpow2.f32 %v956_v51  ;;  %v983_v51 = vmul.f32 %v3351_v9, %v967_v16  ;;  %v992_v16 = vmul.f32 %v3380_v17, %v976_v48  ;;  %v980_v17 = vld [vmem:[#allocation4 + $0x70] sm:$0xff] }
 0x28d   : > { %v2674_v37 = vpop.eup %2673  ;;  %v954_v52 = vmul.f32 1.442695, %v928_v50  ;;  %v3420_v33 = vpop.permute.xlu0 %1096  ;;  %v968_v50 = vld [vmem:[#allocation4 + $0x10] sm:$0xff] }
 0x28e   : > { %v901_v40 = vpop.permute.xlu1 %900  ;;  %1012 = vadd.xlane.f32.xlu1 %v2674_v37  ;;  %v984_v19 = vmul.f32 %v3359_v10, %v968_v50 }
 0x28f   : > { %2683 = vpow2.f32 %v954_v52  ;;  %v930_v56 = vsub.f32 %v3195_v57, %v901_v40 }
 0x290   : > { %2685 = vpow2.f32 %v960_v54 }
 0x291   : > { %v2676_v12 = vpop.eup %2675  ;;  %v958_v42 = vmul.f32 1.442695, %v930_v56  ;;  %v3424_v26 = vpop.permute.xlu0 %1106  ;;  %v970_v56 = vld [vmem:[#allocation4 + $0x20] sm:$0xff] }
 0x292   : > { %v2678_v53 = vpop.eup %2677  ;;  %1010 = vadd.xlane.f32.xlu0 %v2676_v12  ;;  %v911_v44 = vpop.permute.xlu1 %910  ;;  %2402 = vmatprep.mubr.f32.mxu1 %v2676_v12  ;;  %v986_v62 = vmul.f32 %v3367_v14, %v970_v56 }
 0x293   : > { %2687 = vpow2.f32 %v958_v42  ;;  %v932_v55 = vsub.f32 %v3201_v59, %v911_v44  ;;  %1016 = vadd.xlane.f32.xlu1 %v2678_v53  ;;  %2403 = vmatmul.mubr.f32.gmra.mrb[6].mxu1 %v2674_v37  ;;  %v971_v37 = vld [vmem:[#allocation4 + $0x28] sm:$0xff]  ;;  %v973_v42 = vld [vmem:[#allocation4 + $0x38] sm:$0xff] }
 0x294   : > { %2689 = vpow2.f32 %v964_v41  ;;  %v987_v9 = vmul.f32 %v3343_v3, %v971_v37  ;;  %v989_v10 = vmul.f32 %v3349_v5, %v973_v42  ;;  %v1065_v42 = vld [vmem:[#allocation5 + $0x10] sm:$0xff] }
 0x295   : > { %v2680_v58 = vpop.eup %2679  ;;  %v962_v60 = vmul.f32 1.442695, %v932_v55  ;;  %v3428_v36 = vpop.permute.xlu0 %1116  ;;  %v972_v55 = vld [vmem:[#allocation4 + $0x30] sm:$0xff] }
 0x296   : > { %v2682_v43 = vpop.eup %2681  ;;  %1014 = vadd.xlane.f32.xlu0 %v2680_v58  ;;  %2405 = vmatprep.mubr.f32.mxu1 %v2680_v58  ;;  %v3414_v21 = vpop.permute.xlu1 %1086  ;;  %v988_v3 = vmul.f32 %v3373_v15, %v972_v55 }
 0x297   : > { %2691 = vpow2.f32 %v962_v60  ;;  %1020 = vadd.xlane.f32.xlu1 %v2682_v43  ;;  %2406 = vmatmul.mubr.f32.gmra.mrb[8].mxu1 %v2678_v53  ;;  %v975_v60 = vld [vmem:[#allocation4 + $0x48] sm:$0xff] }
 0x298   : > { %2693 = vpow2.f32 %v834_v25 }
 0x299   : > { %v2684_v57 = vpop.eup %2683  ;;  %2695 = vpow2.f32 %v836_v1  ;;  %v3432_v4 = vpop.permute.xlu0 %1126 }
 0x29a   : > { %v2686_v61 = vpop.eup %2685  ;;  %1018 = vadd.xlane.f32.xlu0 %v2684_v57  ;;  %2408 = vmatprep.mubr.f32.mxu1 %v2684_v57  ;;  %v3418_v27 = vpop.permute.xlu1 %1091 }
 0x29b   : > { %1024 = vadd.xlane.f32.xlu1 %v2686_v61  ;;  %2409 = vmatmul.mubr.f32.gmra.mrb[10].mxu1 %v2682_v43  ;;  %v991_v43 = vmul.f32 %v3357_v8, %v975_v60  ;;  %v1067_v60 = vld [vmem:[#allocation5 + $0x20] sm:$0xff] }
 0x29d   : > { %v2688_v20 = vpop.eup %2687  ;;  %v3436_v38 = vpop.permute.xlu0 %1136 }
 0x29e   : > { %v2690_v45 = vpop.eup %2689  ;;  %1022 = vadd.xlane.f32.xlu0 %v2688_v20  ;;  %2411 = vmatprep.mubr.f32.mxu1 %v2688_v20  ;;  %v3422_v29 = vpop.permute.xlu1 %1101 }
 0x29f   : > { %1028 = vadd.xlane.f32.xlu1 %v2690_v45  ;;  %2412 = vmatmul.mubr.f32.gmra.mrb[12].mxu1 %v2686_v61  ;;  %v974_v61 = vld [vmem:[#allocation4 + $0x40] sm:$0xff] }
 0x2a0   : > { %v990_v5 = vmul.f32 %v3377_v7, %v974_v61  ;;  %v978_v7 = vld [vmem:[#allocation4 + $0x60] sm:$0xff] }
 0x2a1   : > { %v2692_v59 = vpop.eup %2691  ;;  %v3441_v0 = vpop.permute.xlu0 %1146 }
 0x2a2   : > { %1026 = vadd.xlane.f32.xlu0 %v2692_v59  ;;  %2414 = vmatprep.mubr.f32.mxu1 %v2692_v59  ;;  %v3408_v46 = vpop.eup %2693  ;;  %v3426_v35 = vpop.permute.xlu1 %1111 }
 0x2a3   : > { %2415 = vmatmul.mubr.f32.gmra.mrb[14].mxu1 %v2690_v45  ;;  %v3411_v2 = vpop.eup %2695  ;;  %v977_v45 = vld [vmem:[#allocation4 + $0x58] sm:$0xff] }
 0x2a4   : > { %v993_v25 = vmul.f32 %v3365_v13, %v977_v45 }
 0x2a6   : > { %v3430_v47 = vpop.permute.xlu1 %1121 }
 0x2aa   : > { %v3434_v30 = vpop.permute.xlu1 %1131 }
 0x2ae   : > { %v3438_v39 = vpop.permute.xlu1 %1141 }
 0x2b0   : > { %1151 = vperm.xlu1 %2632, %v3408_v46  }
 0x2b8   : > { %1156 = vperm.xlu0 %2631, %v3411_v2  }
 0x303   : > { %v999_v11 = vpop.xlane.xlu1 %998 }
 0x304   : > { %v1030_v49 = vadd.f32 %v999_v11, %v982_v63  ;;  %v979_v11 = vld [vmem:[#allocation4 + $0x68] sm:$0xff] }
 0x306   : > { %1047 = vst.msk [vmem:[#allocation4] sm:$0xff] %vm1046_vm4, %v1030_v49  ;;  %v995_v49 = vmul.f32 %v3371_v6, %v979_v11  ;;  %v996_v6 = vmul.f32 %v3408_v46, %v980_v17  ;;  %v1066_v46 = vld [vmem:[#allocation5 + $0x18] sm:$0xff] }
 0x307   : > { %v1001_v23 = vpop.xlane.xlu0 %1000 }
 0x308   : > { %v1031_v31 = vadd.f32 %v1001_v23, %v983_v51 }
 0x30a   : > { %1048 = vst.msk [vmem:[#allocation4 + $0x8] sm:$0xff] %vm1046_vm4, %v1031_v31  ;;  %v981_v31 = vld [vmem:[#allocation4 + $0x78] sm:$0xff] }
 0x30b   : > { %v1005_v28 = vpop.xlane.xlu1 %1004 }
 0x30c   : > { %v1033_v54 = vadd.f32 %v1005_v28, %v985_v32  ;;  %v994_v32 = vmul.f32 %v3383_v22, %v978_v7  ;;  %v997_v28 = vmul.f32 %v3411_v2, %v981_v31  ;;  %v1064_v22 = vld [vmem:[#allocation5 + $0x8] sm:$0xff] }
 0x30d   : > { %v1076_v7 = vld [vmem:[#allocation5 + $0x68] sm:$0xff] }
 0x30e   : > { %1050 = vst.msk [vmem:[#allocation4 + $0x18] sm:$0xff] %vm1046_vm4, %v1033_v54 }
 0x30f   : > { %v1003_v34 = vpop.xlane.xlu0 %1002 }
 0x310   : > { %v1032_v52 = vadd.f32 %v1003_v34, %v984_v19 }
 0x312   : > { %1049 = vst.msk [vmem:[#allocation4 + $0x10] sm:$0xff] %vm1046_vm4, %v1032_v52 }
 0x313   : > { %v1009_v40 = vpop.xlane.xlu1 %1008 }
 0x314   : > { %v1035_v41 = vadd.f32 %v1009_v40, %v987_v9  ;;  %v1063_v9 = vld [vmem:[#allocation5] sm:$0xff]  ;;  %v1160_v40 = vmul.f32 %v3414_v21, %v1064_v22 }
 0x315   : > { %v1159_v2 = vmul.f32 %v3416_v18, %v1063_v9  ;;  %v1068_v18 = vld [vmem:[#allocation5 + $0x28] sm:$0xff] }
 0x316   : > { %1052 = vst.msk [vmem:[#allocation4 + $0x28] sm:$0xff] %vm1046_vm4, %v1035_v41 }
 0x317   : > { %v1007_v12 = vpop.xlane.xlu0 %1006 }
 0x318   : > { %v1034_v53 = vadd.f32 %v1007_v12, %v986_v62 }
 0x31a   : > { %1051 = vst.msk [vmem:[#allocation4 + $0x20] sm:$0xff] %vm1046_vm4, %v1034_v53  ;;  %v1162_v53 = vmul.f32 %v3420_v33, %v1066_v46  ;;  %v1374_v46 = vld [vmem:[#allocation4 + $0x10] sm:$0xff] (!%p2210_p6) }
 0x31b   : > { %v1013_v44 = vpop.xlane.xlu1 %1012 }
 0x31c   : > { %v1037_v58 = vadd.f32 %v1013_v44, %v989_v10  ;;  %v1161_v10 = vmul.f32 %v3418_v27, %v1065_v42  ;;  %v1070_v27 = vld [vmem:[#allocation5 + $0x38] sm:$0xff]  ;;  %v1520_v42 = vld [vmem:[%s3509_s26 + $0x8] sm:$0xff] (!%p2210_p6) }
 0x31d   : > { %v1166_v45 = vmul.f32 %v3428_v36, %v1070_v27 }
 0x31e   : > { %1054 = vst.msk [vmem:[#allocation4 + $0x38] sm:$0xff] %vm1046_vm4, %v1037_v58 }
 0x31f   : > { %v1011_v57 = vpop.xlane.xlu0 %1010 }
 0x320   : > { %v1017_v14 = vpop.xlane.xlu1 %1016  ;;  %v1036_v20 = vadd.f32 %v1011_v57, %v988_v3  ;;  %v1164_v3 = vmul.f32 %v3424_v26, %v1068_v18  ;;  %v1526_v18 = vld [vmem:[%s3509_s26 + $0x38] sm:$0xff] (!%p2210_p6) }
 0x321   : > { %v1039_v59 = vadd.f32 %v1017_v14, %v991_v43  ;;  %v1163_v43 = vmul.f32 %v3422_v29, %v1067_v60  ;;  %v1523_v60 = vld [vmem:[%s3509_s26 + $0x20] sm:$0xff] (!%p2210_p6) }
 0x322   : > { %1053 = vst.msk [vmem:[#allocation4 + $0x30] sm:$0xff] %vm1046_vm4, %v1036_v20  ;;  %v1069_v20 = vld [vmem:[#allocation5 + $0x30] sm:$0xff] }
 0x323   : > { %1056 = vst.msk [vmem:[#allocation4 + $0x48] sm:$0xff] %vm1046_vm4, %v1039_v59  ;;  %v1015_v1 = vpop.xlane.xlu0 %1014  ;;  %v1072_v59 = vld [vmem:[#allocation5 + $0x48] sm:$0xff] }
 0x324   : > { %v1021_v63 = vpop.xlane.xlu1 %1020  ;;  %v1038_v15 = vadd.f32 %v1015_v1, %v990_v5  ;;  %v1165_v5 = vmul.f32 %v3426_v35, %v1069_v20  ;;  %v1071_v1 = vld [vmem:[#allocation5 + $0x40] sm:$0xff] }
 0x325   : > { %v1041_v8 = vadd.f32 %v1021_v63, %v993_v25  ;;  %v1168_v63 = vmul.f32 %v3432_v4, %v1072_v59  ;;  %v1167_v11 = vmul.f32 %v3430_v47, %v1071_v1  ;;  %v1529_v59 = vld [vmem:[%s3509_s26 + $0x50] sm:$0xff] (!%p2210_p6)  ;;  %v1534_v1 = vld [vmem:[%s3509_s26 + $0x78] sm:$0xff] (!%p2210_p6) }
 0x326   : > { %1055 = vst.msk [vmem:[#allocation4 + $0x40] sm:$0xff] %vm1046_vm4, %v1038_v15  ;;  %v1074_v15 = vld [vmem:[#allocation5 + $0x58] sm:$0xff] }
 0x327   : > { %1058 = vst.msk [vmem:[#allocation4 + $0x58] sm:$0xff] %vm1046_vm4, %v1041_v8  ;;  %v1019_v51 = vpop.xlane.xlu0 %1018  ;;  %v1170_v35 = vmul.f32 %v3436_v38, %v1074_v15 }
 0x328   : > { %v1025_v23 = vpop.xlane.xlu1 %1024  ;;  %v1040_v24 = vadd.f32 %v1019_v51, %v992_v16  ;;  %v1073_v16 = vld [vmem:[#allocation5 + $0x50] sm:$0xff] }
 0x329   : > { %v1043_v13 = vadd.f32 %v1025_v23, %v995_v49  ;;  %v1169_v23 = vmul.f32 %v3434_v30, %v1073_v16  ;;  %v1531_v16 = vld [vmem:[%s3509_s26 + $0x60] sm:$0xff] (!%p2210_p6) }
 0x32a   : > { %1057 = vst.msk [vmem:[#allocation4 + $0x50] sm:$0xff] %vm1046_vm4, %v1040_v24  ;;  %v1075_v24 = vld [vmem:[#allocation5 + $0x60] sm:$0xff] }
 0x32b   : > { %1060 = vst.msk [vmem:[#allocation4 + $0x68] sm:$0xff] %vm1046_vm4, %v1043_v13  ;;  %v1023_v50 = vpop.xlane.xlu0 %1022 }
 0x32c   : > { %v1029_v54 = vpop.xlane.xlu1 %1028  ;;  %v1042_v19 = vadd.f32 %v1023_v50, %v994_v32  ;;  %v1172_v32 = vmul.f32 %v3441_v0, %v1076_v7  ;;  %v1078_v50 = vld [vmem:[#allocation5 + $0x78] sm:$0xff]  ;;  %v1377_v7 = vld [vmem:[#allocation4 + $0x28] sm:$0xff] (!%p2210_p6) }
 0x32d   : > { %v1045_v34 = vadd.f32 %v1029_v54, %v997_v28  ;;  %v1171_v28 = vmul.f32 %v3438_v39, %v1075_v24  ;;  %v1077_v54 = vld [vmem:[#allocation5 + $0x70] sm:$0xff] }
 0x32e   : > { %1059 = vst.msk [vmem:[#allocation4 + $0x60] sm:$0xff] %vm1046_vm4, %v1042_v19 }
 0x32f   : > { %1062 = vst.msk [vmem:[#allocation4 + $0x78] sm:$0xff] %vm1046_vm4, %v1045_v34  ;;  %v1027_v37 = vpop.xlane.xlu0 %1026 }
 0x330   : > { %v1044_v52 = vadd.f32 %v1027_v37, %v996_v6  ;;  %v1152_v30 = vpop.permute.xlu1 %1151 }
 0x332   : > { %1061 = vst.msk [vmem:[#allocation4 + $0x70] sm:$0xff] %vm1046_vm4, %v1044_v52  ;;  %v1173_v52 = vmul.f32 %v1152_v30, %v1077_v54 }
 0x337   : > { %v1157_v38 = vpop.permute.xlu0 %1156 }
 0x338   : > { %v1174_v37 = vmul.f32 %v1157_v38, %v1078_v50  ;;  %v1379_v50 = vld [vmem:[#allocation4 + $0x38] sm:$0xff] (!%p2210_p6) }
 0x339   : > { %v1386_v24 = vld [vmem:[#allocation4 + $0x70] sm:$0xff] (!%p2210_p6) }
 0x34d   : > { %v2395_v56 = vpop.f32.mrb[0].mxu1 }
 0x34e   : > { %v1321_v41 = vadd.f32 %v2395_v56, %v1160_v40  ;;  %v1241_v62 = vpop.f32.mrb[1].mxu1  ;;  %v1373_v40 = vld [vmem:[#allocation4 + $0x8] sm:$0xff] (!%p2210_p6) }
 0x34f   : > { %v1320_v12 = vadd.f32 %v1241_v62, %v1159_v2  ;;  %v1372_v2 = vld [vmem:[#allocation4] sm:$0xff] (!%p2210_p6)  ;;  %v1381_v56 = vld [vmem:[#allocation4 + $0x48] sm:$0xff] (!%p2210_p6)  ;;  %2699 = vrcp.f32 (!%p2210_p6), %v1373_v40 }
 0x350   : > { %1337 = vst.msk [vmem:[#allocation5 + $0x8] sm:$0xff] %vm484_vm2, %v1321_v41  ;;  %v2862_v41 = vmov (!%p2210_p6), 0   ;;  %v1380_v62 = vld [vmem:[#allocation4 + $0x40] sm:$0xff] (!%p2210_p6)  ;;  %2701 = vrcp.f32 (!%p2210_p6), %v1372_v2 }
 0x351   : > { %1336 = vst.msk [vmem:[#allocation5] sm:$0xff] %vm484_vm2, %v1320_v12  ;;  %2698 = vset.pattern.permute.xlu1 (!%p2210_p6), %v2862_v41  ;;  %2697 = vset.pattern.permute.xlu0 (!%p2210_p6), %v2862_v41  ;;  %2703 = vrcp.f32 (!%p2210_p6), %v1381_v56  ;;  %v1382_v12 = vld [vmem:[#allocation4 + $0x50] sm:$0xff] (!%p2210_p6) }
 0x352   : > { %2705 = vrcp.f32 (!%p2210_p6), %v1380_v62 }
 0x353   : > { %2707 = vrcp.f32 (!%p2210_p6), %v1382_v12 }
 0x354   : > { %2709 = vrcp.f32 (!%p2210_p6), %v1374_v46 }
 0x356   : > { %v2398_v44 = vpop.f32.mrb[2].mxu1 }
 0x357   : > { %v1323_v55 = vadd.f32 %v2398_v44, %v1162_v53  ;;  %v1251_v58 = vpop.f32.mrb[3].mxu1  ;;  %v1522_v53 = vld [vmem:[%s3509_s26 + $0x18] sm:$0xff] (!%p2210_p6)  ;;  %v1519_v44 = vld [vmem:[%s3509_s26] sm:$0xff] (!%p2210_p6) }
 0x358   : > { %v1322_v21 = vadd.f32 %v1251_v58, %v1161_v10  ;;  %v2497_v10 = vpack.c.bf16 (!%p2210_p6), %v1522_v53, %v1520_v42  ;;  %v1524_v58 = vld [vmem:[%s3509_s26 + $0x28] sm:$0xff] (!%p2210_p6) }
 0x359   : > { %1339 = vst.msk [vmem:[#allocation5 + $0x18] sm:$0xff] %vm484_vm2, %v1323_v55  ;;  %v1521_v55 = vld [vmem:[%s3509_s26 + $0x10] sm:$0xff] (!%p2210_p6) }
 0x35a   : > { %1338 = vst.msk [vmem:[#allocation5 + $0x10] sm:$0xff] %vm484_vm2, %v1322_v21  ;;  %v2499_v21 = vpack.c.bf16 (!%p2210_p6), %v1521_v55, %v1519_v44  ;;  %2498 = vmatprep.subr.bf16.mxu0 (!%p2210_p6), %v2497_v10  ;;  %2513 = vmatprep.subr.bf16.mxu1 (!%p2210_p6), %v2497_v10 }
 0x35c   : > { %2500 = vmatpush1.bf16.msra.mxu0 (!%p2210_p6), %v2499_v21  ;;  %2517 = vmatpush1.bf16.msra.mxu1 (!%p2210_p6), %v2499_v21 }
 0x35e   : > { %v2401_v57 = vpop.f32.mrb[4].mxu1 }
 0x35f   : > { %v1325_v61 = vadd.f32 %v2401_v57, %v1164_v3  ;;  %v1261_v14 = vpop.f32.mrb[5].mxu1  ;;  %v1525_v3 = vld [vmem:[%s3509_s26 + $0x30] sm:$0xff] (!%p2210_p6)  ;;  %v2501_v57 = vpack.c.bf16 (!%p2210_p6), %v1526_v18, %v1524_v58 }
 0x360   : > { %v1324_v33 = vadd.f32 %v1261_v14, %v1163_v43  ;;  %v1383_v43 = vld [vmem:[#allocation4 + $0x58] sm:$0xff] (!%p2210_p6)  ;;  %v2503_v27 = vpack.c.bf16 (!%p2210_p6), %v1525_v3, %v1523_v60 }
 0x361   : > { %1341 = vst.msk [vmem:[#allocation5 + $0x28] sm:$0xff] %vm484_vm2, %v1325_v61  ;;  %v1528_v61 = vld [vmem:[%s3509_s26 + $0x48] sm:$0xff] (!%p2210_p6)  ;;  %v1530_v14 = vld [vmem:[%s3509_s26 + $0x58] sm:$0xff] (!%p2210_p6)  ;;  %2502 = vmatprep.subr.bf16.mxu0 (!%p2210_p6), %v2501_v57  ;;  %2514 = vmatprep.subr.bf16.mxu1 (!%p2210_p6), %v2501_v57  ;;  %2711 = vrcp.f32 (!%p2210_p6), %v1383_v43  ;;  %v1406_v12 = vld [vmem:[#allocation5 + $0x10] sm:$0xff] (!%p2210_p6) }
 0x362   : > { %1340 = vst.msk [vmem:[#allocation5 + $0x20] sm:$0xff] %vm484_vm2, %v1324_v33  ;;  %v1375_v33 = vld [vmem:[#allocation4 + $0x18] sm:$0xff] (!%p2210_p6)  ;;  %v2505_v20 = vpack.c.bf16 (!%p2210_p6), %v1530_v14, %v1528_v61  ;;  %2504 = vmatpush1.bf16.msra.mxu0 (!%p2210_p6), %v2503_v27  ;;  %2518 = vmatpush1.bf16.msra.mxu1 (!%p2210_p6), %v2503_v27 }
 0x363   : > { %2713 = vrcp.f32 (!%p2210_p6), %v1375_v33  ;;  %v1407_v55 = vld [vmem:[#allocation5 + $0x18] sm:$0xff] (!%p2210_p6) }
 0x364   : > { %2506 = vmatprep.subr.bf16.mxu0 (!%p2210_p6), %v2505_v20  ;;  %2515 = vmatprep.subr.bf16.mxu1 (!%p2210_p6), %v2505_v20 }
 0x366   : > { %v2404_v25 = vpop.f32.mrb[6].mxu1 }
 0x367   : > { %v1327_v26 = vadd.f32 %v2404_v25, %v1166_v45  ;;  %v1271_v48 = vpop.f32.mrb[7].mxu1  ;;  %v1527_v45 = vld [vmem:[%s3509_s26 + $0x40] sm:$0xff] (!%p2210_p6)  ;;  %v1532_v25 = vld [vmem:[%s3509_s26 + $0x68] sm:$0xff] (!%p2210_p6) }
 0x368   : > { %v1326_v29 = vadd.f32 %v1271_v48, %v1165_v5  ;;  %v2700_v5 = vpop.eup (!%p2210_p6), %2699  ;;  %v1384_v48 = vld [vmem:[#allocation4 + $0x60] sm:$0xff] (!%p2210_p6)  ;;  %v2507_v15 = vpack.c.bf16 (!%p2210_p6), %v1529_v59, %v1527_v45  ;;  %v1409_v20 = vld [vmem:[#allocation5 + $0x28] sm:$0xff] (!%p2210_p6) }
 0x369   : > { %1343 = vst.msk [vmem:[#allocation5 + $0x38] sm:$0xff] %vm484_vm2, %v1327_v26  ;;  %v2702_v26 = vpop.eup (!%p2210_p6), %2701  ;;  %1427 = vperm.xlu1 (!%p2210_p6), %2698, %v2700_v5   ;;  %2715 = vrcp.f32 (!%p2210_p6), %v1384_v48  ;;  %v1408_v43 = vld [vmem:[#allocation5 + $0x20] sm:$0xff] (!%p2210_p6) }
 0x36a   : > { %1342 = vst.msk [vmem:[#allocation5 + $0x30] sm:$0xff] %vm484_vm2, %v1326_v29  ;;  %v2407_v8 = vpop.f32.mrb[8].mxu1  ;;  %v2704_v29 = vpop.eup (!%p2210_p6), %2703  ;;  %1422 = vperm.xlu0 (!%p2210_p6), %2697, %v2702_v26   ;;  %2508 = vmatpush1.bf16.msra.mxu0 (!%p2210_p6), %v2507_v15 }
 0x36b   : > { %v1329_v36 = vadd.f32 %v2407_v8, %v1168_v63  ;;  %v1281_v49 = vpop.f32.mrb[9].mxu1  ;;  %v1376_v63 = vld [vmem:[#allocation4 + $0x20] sm:$0xff] (!%p2210_p6)  ;;  %v2509_v8 = vpack.c.bf16 (!%p2210_p6), %v1534_v1, %v1532_v25  ;;  %2519 = vmatpush1.bf16.msra.mxu1 (!%p2210_p6), %v2507_v15 }
 0x36c   : > { %v1328_v51 = vadd.f32 %v1281_v49, %v1167_v11  ;;  %v2706_v11 = vpop.eup (!%p2210_p6), %2705  ;;  %v2863_v49 = vmov (!%p2210_p6), 0.0   ;;  %2717 = vrcp.f32 (!%p2210_p6), %v1376_v63 }
 0x36d   : > { %1345 = vst.msk [vmem:[#allocation5 + $0x48] sm:$0xff] %vm484_vm2, %v1329_v36  ;;  %v1533_v36 = vld [vmem:[%s3509_s26 + $0x70] sm:$0xff] (!%p2210_p6)  ;;  %1647 = vmatprep.mubr.f32.mxu0 (!%p2210_p6), %v2863_v49  ;;  %1467 = vperm.xlu1 (!%p2210_p6), %2698, %v2704_v29  }
 0x36e   : > { %1344 = vst.msk [vmem:[#allocation5 + $0x40] sm:$0xff] %vm484_vm2, %v1328_v51  ;;  %v2410_v4 = vpop.f32.mrb[10].mxu1  ;;  %v1385_v51 = vld [vmem:[#allocation4 + $0x68] sm:$0xff] (!%p2210_p6)  ;;  %1695 = vmatprep.mubr.f32.mxu1 (!%p2210_p6), %v2863_v49  ;;  %1462 = vperm.xlu0 (!%p2210_p6), %2697, %v2706_v11  }
 0x36f   : > { %v1331_v31 = vadd.f32 %v2410_v4, %v1170_v35  ;;  %v1291_v47 = vpop.f32.mrb[11].mxu1  ;;  %v2708_v35 = vpop.eup (!%p2210_p6), %2707  ;;  %2510 = vmatprep.subr.bf16.mxu0 (!%p2210_p6), %v2509_v8  ;;  %2719 = vrcp.f32 (!%p2210_p6), %v1385_v51  ;;  %2516 = vmatprep.subr.bf16.mxu1 (!%p2210_p6), %v2509_v8 }
 0x370   : > { %v1330_v13 = vadd.f32 %v1291_v47, %v1169_v23  ;;  %v2511_v23 = vpack.c.bf16 (!%p2210_p6), %v1533_v36, %v1531_v16  ;;  %v2710_v4 = vpop.eup (!%p2210_p6), %2709  ;;  %2721 = vrcp.f32 (!%p2210_p6), %v1377_v7  ;;  %v1378_v47 = vld [vmem:[#allocation4 + $0x30] sm:$0xff] (!%p2210_p6)  ;;  %v1411_v8 = vld [vmem:[#allocation5 + $0x38] sm:$0xff] (!%p2210_p6) }
 0x371   : > { %1347 = vst.msk [vmem:[#allocation5 + $0x58] sm:$0xff] %vm484_vm2, %v1331_v31  ;;  %1472 = vperm.xlu1 (!%p2210_p6), %2698, %v2708_v35   ;;  %v2712_v31 = vpop.eup (!%p2210_p6), %2711  ;;  %2723 = vrcp.f32 (!%p2210_p6), %v1386_v24  ;;  %v1410_v26 = vld [vmem:[#allocation5 + $0x30] sm:$0xff] (!%p2210_p6) }
 0x372   : > { %1346 = vst.msk [vmem:[#allocation5 + $0x50] sm:$0xff] %vm484_vm2, %v1330_v13  ;;  %v2413_v17 = vpop.f32.mrb[12].mxu1  ;;  %1432 = vperm.xlu0 (!%p2210_p6), %2697, %v2710_v4   ;;  %2512 = vmatpush1.bf16.msra.mxu0 (!%p2210_p6), %v2511_v23  ;;  %v2714_v13 = vpop.eup (!%p2210_p6), %2713  ;;  %2725 = vrcp.f32 (!%p2210_p6), %v1378_v47 }
 0x373   : > { %v1333_v19 = vadd.f32 %v2413_v17, %v1172_v32  ;;  %v1301_v34 = vpop.f32.mrb[13].mxu1  ;;  %2520 = vmatpush1.bf16.msra.mxu1 (!%p2210_p6), %v2511_v23  ;;  %v1387_v32 = vld [vmem:[#allocation4 + $0x78] sm:$0xff] (!%p2210_p6) }
 0x374   : > { %v1332_v6 = vadd.f32 %v1301_v34, %v1171_v28  ;;  %1371 = sbr.rel (%p2210_p6) target bundleno = 1290 (0x50a), region = 48  ;;  %v2716_v28 = vpop.eup (!%p2210_p6), %2715  ;;  %2727 = vrcp.f32 (!%p2210_p6), %v1387_v32  ;;  %v1413_v62 = vld [vmem:[#allocation5 + $0x48] sm:$0xff] (!%p2210_p6) }
 0x375   : > { %1349 = vst.msk [vmem:[#allocation5 + $0x68] sm:$0xff] %vm484_vm2, %v1333_v19  ;;  %1477 = vperm.xlu1 (!%p2210_p6), %2698, %v2712_v31   ;;  %2729 = vrcp.f32 (!%p2210_p6), %v1379_v50 }
 0x376   : > { %1348 = vst.msk [vmem:[#allocation5 + $0x60] sm:$0xff] %vm484_vm2, %v1332_v6  ;;  %v2416_v0 = vpop.f32.mrb[14].mxu1  ;;  %1437 = vperm.xlu0 (!%p2210_p6), %2697, %v2714_v13   ;;  %v2718_v38 = vpop.eup (!%p2210_p6), %2717 }
 0x377   : > { %v1335_v22 = vadd.f32 %v2416_v0, %v1174_v37  ;;  %v1311_v9 = vpop.f32.mrb[15].mxu1  ;;  %v1404_v37 = vld [vmem:[#allocation5] sm:$0xff] (!%p2210_p6)  ;;  %v1405_v0 = vld [vmem:[#allocation5 + $0x8] sm:$0xff] (!%p2210_p6) }
 0x378   : > { %v1334_v39 = vadd.f32 %v1311_v9, %v1173_v52  ;;  %v1415_v3 = vld [vmem:[#allocation5 + $0x58] sm:$0xff] (!%p2210_p6) }
 0x379   : > { %1351 = vst.msk [vmem:[#allocation5 + $0x78] sm:$0xff] %vm484_vm2, %v1335_v22  ;;  %1482 = vperm.xlu1 (!%p2210_p6), %2698, %v2716_v28   ;;  %v2720_v17 = vpop.eup (!%p2210_p6), %2719  ;;  %v1414_v44 = vld [vmem:[#allocation5 + $0x50] sm:$0xff] (!%p2210_p6) }
 0x37a   : > { %1350 = vst.msk [vmem:[#allocation5 + $0x70] sm:$0xff] %vm484_vm2, %v1334_v39  ;;  %1442 = vperm.xlu0 (!%p2210_p6), %2697, %v2718_v38   ;;  %v2722_v54 = vpop.eup (!%p2210_p6), %2721  ;;  %v1412_v39 = vld [vmem:[#allocation5 + $0x40] sm:$0xff] (!%p2210_p6) }
 0x37b   : > { %v2724_v30 = vpop.eup %2723 }
 0x37c   : > { %v2726_v19 = vpop.eup %2725  ;;  %v1417_v1 = vld [vmem:[#allocation5 + $0x68] sm:$0xff] }
 0x37d   : > { %1487 = vperm.xlu1 %2698, %v2720_v17   ;;  %v1416_v27 = vld [vmem:[#allocation5 + $0x60] sm:$0xff] }
 0x37e   : > { %1447 = vperm.xlu0 %2697, %v2722_v54   ;;  %v2728_v34 = vpop.eup %2727 }
 0x37f   : > { %v2730_v6 = vpop.eup %2729 }
 0x380   : > { %v1419_v35 = vld [vmem:[#allocation5 + $0x78] sm:$0xff] }
 0x381   : > { %1492 = vperm.xlu1 %2698, %v2724_v30   ;;  %v1418_v11 = vld [vmem:[#allocation5 + $0x70] sm:$0xff] }
 0x382   : > { %1452 = vperm.xlu0 %2697, %v2726_v19  }
 0x385   : > { %1497 = vperm.xlu1 %2698, %v2728_v34  }
 0x386   : > { %1457 = vperm.xlu0 %2697, %v2730_v6  }
 0x3e8   : > { %v1428_v52 = vpop.permute.xlu1 %1427 }
 0x3e9   : > { %v1423_v22 = vpop.permute.xlu0 %1422  ;;  %v1501_v40 = vmul.f32 %v1428_v52, %v1405_v0 }
 0x3ea   : > { %v1500_v9 = vmul.f32 %v1423_v22, %v1404_v37 }
 0x3ec   : > { %2213 = vmatmul.mubr.msk.f32.vlgmr.msra.gmra.mrb[0].mxu0 %vm484_vm2, %v1500_v9  ;;  %v1468_v2 = vpop.permute.xlu1 %1467 }
 0x3ed   : > { %v1463_v56 = vpop.permute.xlu0 %1462  ;;  %1653 = vmatprep.mubr.f32.mxu0 %v2863_v49  ;;  %v1509_v53 = vmul.f32 %v1468_v2, %v1413_v62 }
 0x3ee   : > { %v1508_v41 = vmul.f32 %v1463_v56, %v1412_v39 }
 0x3f0   : > { %2214 = vmatmul.mubr.msk.f32.gmra.mrb[2].mxu0 %vm484_vm2, %v1501_v40  ;;  %2221 = vmatmul.mubr.msk.f32.vlgmr.msra.gmra.mrb[0].mxu1 %vm484_vm2, %v1508_v41  ;;  %v1473_v46 = vpop.permute.xlu1 %1472 }
 0x3f1   : > { %v1433_v42 = vpop.permute.xlu0 %1432  ;;  %1659 = vmatprep.mubr.f32.mxu0 %v2863_v49  ;;  %1701 = vmatprep.mubr.f32.mxu1 %v2863_v49  ;;  %v1510_v18 = vmul.f32 %v1473_v46, %v1414_v44  ;;  %v1750_v44 = vlaneseq (!%p2229_p8) }
 0x3f2   : > { %v1502_v10 = vmul.f32 %v1433_v42, %v1406_v12 }
 0x3f4   : > { %2215 = vmatmul.mubr.msk.f32.gmra.mrb[4].mxu0 %vm484_vm2, %v1502_v10  ;;  %2222 = vmatmul.mubr.msk.f32.gmra.mrb[2].mxu1 %vm484_vm2, %v1509_v53  ;;  %v1478_v58 = vpop.permute.xlu1 %1477 }
 0x3f5   : > { %v1438_v21 = vpop.permute.xlu0 %1437  ;;  %1665 = vmatprep.mubr.f32.mxu0 %v2863_v49  ;;  %1707 = vmatprep.mubr.f32.mxu1 %v2863_v49  ;;  %v1511_v14 = vmul.f32 %v1478_v58, %v1415_v3  ;;  %v1748_v58 = vld [vmem:[%s3805_s4] sm:$0x3] (!%p2229_p8) }
 0x3f6   : > { %v1503_v60 = vmul.f32 %v1438_v21, %v1407_v55  ;;  %v1751_v55 = vshrl.u32 (!%p2229_p8), %v1750_v44, 7 }
 0x3f8   : > { %2216 = vmatmul.mubr.msk.f32.gmra.mrb[6].mxu0 %vm484_vm2, %v1503_v60  ;;  %2223 = vmatmul.mubr.msk.f32.gmra.mrb[4].mxu1 %vm484_vm2, %v1510_v18  ;;  %v1483_v57 = vpop.permute.xlu1 %1482  ;;  %v1752_v21 = vsub.s32 (!%p2229_p8), 0, %v1751_v55  ;;  %v1756_v18 = vsub.s32 (!%p2229_p8), 1, %v1751_v55 }
 0x3f9   : > { %v1443_v61 = vpop.permute.xlu0 %1442  ;;  %1671 = vmatprep.mubr.f32.mxu0 %v2863_v49  ;;  %1713 = vmatprep.mubr.f32.mxu1 %v2863_v49  ;;  %v1512_v5 = vmul.f32 %v1483_v57, %v1416_v27 }
 0x3fa   : > { %v1504_v33 = vmul.f32 %v1443_v61, %v1408_v43  ;;  %v1753_v60 = vrot.slane (!%p2229_p8), %v1748_v58, %v1752_v21  ;;  %v1757_v3 = vrot.slane (!%p2229_p8), %v1748_v58, %v1756_v18 }
 0x3fc   : > { %2217 = vmatmul.mubr.msk.f32.gmra.mrb[8].mxu0 %vm484_vm2, %v1504_v33  ;;  %2224 = vmatmul.mubr.msk.f32.gmra.mrb[6].mxu1 %vm484_vm2, %v1511_v14  ;;  %v1488_v45 = vpop.permute.xlu1 %1487 }
 0x3fd   : > { %v1448_v59 = vpop.permute.xlu0 %1447  ;;  %1677 = vmatprep.mubr.f32.mxu0 %v2863_v49  ;;  %1719 = vmatprep.mubr.f32.mxu1 %v2863_v49  ;;  %v1513_v63 = vmul.f32 %v1488_v45, %v1417_v1 }
 0x3fe   : > { %v1505_v25 = vmul.f32 %v1448_v59, %v1409_v20 }
 0x400   : > { %2218 = vmatmul.mubr.msk.f32.gmra.mrb[10].mxu0 %vm484_vm2, %v1505_v25  ;;  %2225 = vmatmul.mubr.msk.f32.gmra.mrb[8].mxu1 %vm484_vm2, %v1512_v5  ;;  %v1493_v48 = vpop.permute.xlu1 %1492 }
 0x401   : > { %v1453_v29 = vpop.permute.xlu0 %1452  ;;  %1683 = vmatprep.mubr.f32.mxu0 %v2863_v49  ;;  %1725 = vmatprep.mubr.f32.mxu1 %v2863_v49  ;;  %v1514_v36 = vmul.f32 %v1493_v48, %v1418_v11 }
 0x402   : > { %v1506_v15 = vmul.f32 %v1453_v29, %v1410_v26 }
 0x404   : > { %2219 = vmatmul.mubr.msk.f32.gmra.mrb[12].mxu0 %vm484_vm2, %v1506_v15  ;;  %2226 = vmatmul.mubr.msk.f32.gmra.mrb[10].mxu1 %vm484_vm2, %v1513_v63  ;;  %v1498_v7 = vpop.permute.xlu1 %1497 }
 0x405   : > { %v1458_v16 = vpop.permute.xlu0 %1457  ;;  %1689 = vmatprep.mubr.f32.mxu0 %v2863_v49  ;;  %1731 = vmatprep.mubr.f32.mxu1 %v2863_v49  ;;  %v1515_v23 = vmul.f32 %v1498_v7, %v1419_v35 }
 0x406   : > { %v1507_v51 = vmul.f32 %v1458_v16, %v1411_v8 }
 0x408   : > { %2220 = vmatmul.mubr.msk.f32.gmra.mrb[14].mxu0 %vm484_vm2, %v1507_v51  ;;  %2227 = vmatmul.mubr.msk.f32.gmra.mrb[12].mxu1 %vm484_vm2, %v1514_v36 }
 0x409   : > { %1737 = vmatprep.mubr.f32.mxu1 %v2863_v49 }
 0x40c   : > { %2228 = vmatmul.mubr.msk.f32.gmra.mrb[14].mxu1 %vm484_vm2, %v1515_v23 }
 0x4bf   : > { %v3559_v4 = vpop.f32.mrb[0].mxu0 }
 0x4c0   : > { %v3561_v24 = vpop.f32.mrb[1].mxu0  ;;  %v1760_v43 = vadd.f32 (!%p2229_p8), %v1753_v60, %v3559_v4 }
 0x4c1   : > { %v1761_v57 = vadd.f32 (!%p2229_p8), %v1757_v3, %v3561_v24 }
 0x4c2   : > { %1792 = vst [vmem:[#allocation2] sm:$0xff] (!%p2229_p8), %v1760_v43 }
 0x4c3   : > { %v3563_v31 = vpop.f32.mrb[2].mxu0  ;;  %v3565_v47 = vpop.f32.mrb[0].mxu1  ;;  %1793 = vst [vmem:[#allocation2 + $0x8] sm:$0xff] (!%p2229_p8), %v1761_v57 }
 0x4c4   : > { %v3567_v13 = vpop.f32.mrb[3].mxu0  ;;  %v3569_v32 = vpop.f32.mrb[1].mxu1  ;;  %v1762_v61 = vadd.f32 (!%p2229_p8), %v1753_v60, %v3563_v31  ;;  %v1776_v15 = vadd.f32 (!%p2229_p8), %v1753_v60, %v3565_v47 }
 0x4c5   : > { %v1763_v14 = vadd.f32 (!%p2229_p8), %v1757_v3, %v3567_v13  ;;  %v1777_v11 = vadd.f32 (!%p2229_p8), %v1757_v3, %v3569_v32 }
 0x4c6   : > { %1794 = vst [vmem:[#allocation2 + $0x10] sm:$0xff] (!%p2229_p8), %v1762_v61  ;;  %1808 = vst [vmem:[#allocation2 + $0x80] sm:$0xff] (!%p2229_p8), %v1776_v15 }
 0x4c7   : > { %v3571_v28 = vpop.f32.mrb[4].mxu0  ;;  %v3573_v50 = vpop.f32.mrb[2].mxu1  ;;  %1795 = vst [vmem:[#allocation2 + $0x18] sm:$0xff] (!%p2229_p8), %v1763_v14  ;;  %1809 = vst [vmem:[#allocation2 + $0x88] sm:$0xff] (!%p2229_p8), %v1777_v11 }
 0x4c8   : > { %v3575_v49 = vpop.f32.mrb[5].mxu0  ;;  %v3577_v38 = vpop.f32.mrb[3].mxu1  ;;  %v1764_v33 = vadd.f32 (!%p2229_p8), %v1753_v60, %v3571_v28  ;;  %v1778_v8 = vadd.f32 (!%p2229_p8), %v1753_v60, %v3573_v50 }
 0x4c9   : > { %v1765_v27 = vadd.f32 (!%p2229_p8), %v1757_v3, %v3575_v49  ;;  %v1779_v16 = vadd.f32 (!%p2229_p8), %v1757_v3, %v3577_v38 }
 0x4ca   : > { %1796 = vst [vmem:[#allocation2 + $0x20] sm:$0xff] (!%p2229_p8), %v1764_v33  ;;  %1810 = vst [vmem:[#allocation2 + $0x90] sm:$0xff] (!%p2229_p8), %v1778_v8 }
 0x4cb   : > { %v3579_v17 = vpop.f32.mrb[6].mxu0  ;;  %v3581_v54 = vpop.f32.mrb[4].mxu1  ;;  %1797 = vst [vmem:[#allocation2 + $0x28] sm:$0xff] (!%p2229_p8), %v1765_v27  ;;  %1811 = vst [vmem:[#allocation2 + $0x98] sm:$0xff] (!%p2229_p8), %v1779_v16 }
 0x4cc   : > { %v3583_v30 = vpop.f32.mrb[7].mxu0  ;;  %v3585_v19 = vpop.f32.mrb[5].mxu1  ;;  %v1766_v20 = vadd.f32 (!%p2229_p8), %v1753_v60, %v3579_v17  ;;  %v1780_v36 = vadd.f32 (!%p2229_p8), %v1753_v60, %v3581_v54 }
 0x4cd   : > { %v1767_v45 = vadd.f32 (!%p2229_p8), %v1757_v3, %v3583_v30  ;;  %v1781_v51 = vadd.f32 (!%p2229_p8), %v1757_v3, %v3585_v19 }
 0x4ce   : > { %1798 = vst [vmem:[#allocation2 + $0x30] sm:$0xff] (!%p2229_p8), %v1766_v20  ;;  %1812 = vst [vmem:[#allocation2 + $0xa0] sm:$0xff] (!%p2229_p8), %v1780_v36 }
 0x4cf   : > { %v3587_v34 = vpop.f32.mrb[8].mxu0  ;;  %v3589_v6 = vpop.f32.mrb[6].mxu1  ;;  %1799 = vst [vmem:[#allocation2 + $0x38] sm:$0xff] (!%p2229_p8), %v1767_v45  ;;  %1813 = vst [vmem:[#allocation2 + $0xa8] sm:$0xff] (!%p2229_p8), %v1781_v51 }
 0x4d0   : > { %v3591_v37 = vpop.f32.mrb[9].mxu0  ;;  %v3593_v52 = vpop.f32.mrb[7].mxu1  ;;  %v1768_v59 = vadd.f32 (!%p2229_p8), %v1753_v60, %v3587_v34  ;;  %v1782_v35 = vadd.f32 (!%p2229_p8), %v1753_v60, %v3589_v6 }
 0x4d1   : > { %v1769_v5 = vadd.f32 (!%p2229_p8), %v1757_v3, %v3591_v37  ;;  %v1783_v7 = vadd.f32 (!%p2229_p8), %v1757_v3, %v3593_v52 }
 0x4d2   : > { %1800 = vst [vmem:[#allocation2 + $0x40] sm:$0xff] (!%p2229_p8), %v1768_v59  ;;  %1814 = vst [vmem:[#allocation2 + $0xb0] sm:$0xff] (!%p2229_p8), %v1782_v35 }
 0x4d3   : > { %v3595_v0 = vpop.f32.mrb[10].mxu0  ;;  %v3597_v22 = vpop.f32.mrb[8].mxu1  ;;  %1801 = vst [vmem:[#allocation2 + $0x48] sm:$0xff] (!%p2229_p8), %v1769_v5  ;;  %1815 = vst [vmem:[#allocation2 + $0xb8] sm:$0xff] (!%p2229_p8), %v1783_v7 }
 0x4d4   : > { %v3599_v9 = vpop.f32.mrb[11].mxu0  ;;  %v3601_v39 = vpop.f32.mrb[9].mxu1  ;;  %v1770_v25 = vadd.f32 (!%p2229_p8), %v1753_v60, %v3595_v0  ;;  %v1784_v23 = vadd.f32 (!%p2229_p8), %v1753_v60, %v3597_v22 }
 0x4d5   : > { %v1771_v1 = vadd.f32 (!%p2229_p8), %v1757_v3, %v3599_v9  ;;  %v1785_v44 = vadd.f32 (!%p2229_p8), %v1757_v3, %v3601_v39 }
 0x4d6   : > { %1802 = vst [vmem:[#allocation2 + $0x50] sm:$0xff] (!%p2229_p8), %v1770_v25  ;;  %1816 = vst [vmem:[#allocation2 + $0xc0] sm:$0xff] (!%p2229_p8), %v1784_v23 }
 0x4d7   : > { %v3603_v40 = vpop.f32.mrb[12].mxu0  ;;  %v3605_v2 = vpop.f32.mrb[10].mxu1  ;;  %1803 = vst [vmem:[#allocation2 + $0x58] sm:$0xff] (!%p2229_p8), %v1771_v1  ;;  %1817 = vst [vmem:[#allocation2 + $0xc8] sm:$0xff] (!%p2229_p8), %v1785_v44 }
 0x4d8   : > { %v3607_v56 = vpop.f32.mrb[13].mxu0  ;;  %v3609_v41 = vpop.f32.mrb[11].mxu1  ;;  %v1772_v26 = vadd.f32 (!%p2229_p8), %v1753_v60, %v3603_v40  ;;  %v1786_v55 = vadd.f32 (!%p2229_p8), %v1753_v60, %v3605_v2 }
 0x4d9   : > { %v1773_v48 = vadd.f32 (!%p2229_p8), %v1757_v3, %v3607_v56  ;;  %v1787_v58 = vadd.f32 (!%p2229_p8), %v1757_v3, %v3609_v41 }
 0x4da   : > { %1747 = sbr.rel (%p2229_p8) target bundleno = 1252 (0x4e4), region = 52  ;;  %1804 = vst [vmem:[#allocation2 + $0x60] sm:$0xff] (!%p2229_p8), %v1772_v26  ;;  %1818 = vst [vmem:[#allocation2 + $0xd0] sm:$0xff] (!%p2229_p8), %v1786_v55 }
 0x4db   : > { %v3611_v62 = vpop.f32.mrb[14].mxu0  ;;  %v3613_v12 = vpop.f32.mrb[12].mxu1  ;;  %1805 = vst [vmem:[#allocation2 + $0x68] sm:$0xff] (!%p2229_p8), %v1773_v48  ;;  %1819 = vst [vmem:[#allocation2 + $0xd8] sm:$0xff] (!%p2229_p8), %v1787_v58 }
 0x4dc   : > { %v3615_v46 = vpop.f32.mrb[15].mxu0  ;;  %v3617_v42 = vpop.f32.mrb[13].mxu1  ;;  %v1774_v29 = vadd.f32 (!%p2229_p8), %v1753_v60, %v3611_v62  ;;  %v1788_v21 = vadd.f32 (!%p2229_p8), %v1753_v60, %v3613_v12 }
 0x4dd   : > { %v1775_v63 = vadd.f32 (!%p2229_p8), %v1757_v3, %v3615_v46  ;;  %v1789_v18 = vadd.f32 (!%p2229_p8), %v1757_v3, %v3617_v42 }
 0x4de   : > { %1806 = vst [vmem:[#allocation2 + $0x70] sm:$0xff] (!%p2229_p8), %v1774_v29  ;;  %1820 = vst [vmem:[#allocation2 + $0xe0] sm:$0xff] (!%p2229_p8), %v1788_v21 }
 0x4df   : > { %v3619_v53 = vpop.f32.mrb[14].mxu1  ;;  %1807 = vst [vmem:[#allocation2 + $0x78] sm:$0xff] (!%p2229_p8), %v1775_v63  ;;  %1821 = vst [vmem:[#allocation2 + $0xe8] sm:$0xff] (!%p2229_p8), %v1789_v18 }
 0x4e0   : > { %v3621_v10 = vpop.f32.mrb[15].mxu1  ;;  %v1790_v43 = vadd.f32 (!%p2229_p8), %v1753_v60, %v3619_v53 }
 0x4e1   : > { %v1791_v57 = vadd.f32 %v1757_v3, %v3621_v10 }
 0x4e2   : > { %1822 = vst [vmem:[#allocation2 + $0xf0] sm:$0xff] %v1790_v43 }
 0x4e3   : > { %1823 = vst [vmem:[#allocation2 + $0xf8] sm:$0xff] %v1791_v57 }
 0x4e4 PF: > { %p2230_p9 = scmp.le.s32.totalorder %s2829_s22, 0 }
 0x4e5   : > { %v1828_v61 = vld [vmem:[#allocation2] sm:$0xff] (!%p2230_p9)  ;;  %v1829_v14 = vld [vmem:[#allocation2 + $0x8] sm:$0xff] (!%p2230_p9)  ;;  %v1830_v33 = vld [vmem:[#allocation2 + $0x10] sm:$0xff] (!%p2230_p9) }
 0x4e6   : > { %1827 = sbr.rel (%p2230_p9) target bundleno = 1272 (0x4f8), region = 56  ;;  %v1860_v27 = vadd.f32 (!%p2230_p9), %v1828_v61, %v3559_v4  ;;  %v1861_v60 = vadd.f32 (!%p2230_p9), %v1829_v14, %v3561_v24  ;;  %v1862_v3 = vadd.f32 (!%p2230_p9), %v1830_v33, %v3563_v31  ;;  %v1831_v20 = vld [vmem:[#allocation2 + $0x18] sm:$0xff] (!%p2230_p9)  ;;  %v1832_v45 = vld [vmem:[#allocation2 + $0x20] sm:$0xff] (!%p2230_p9)  ;;  %v1833_v59 = vld [vmem:[#allocation2 + $0x28] sm:$0xff] (!%p2230_p9) }
 0x4e7   : > { %v1863_v5 = vadd.f32 (!%p2230_p9), %v1831_v20, %v3567_v13  ;;  %v1864_v25 = vadd.f32 (!%p2230_p9), %v1832_v45, %v3571_v28  ;;  %v1865_v1 = vadd.f32 (!%p2230_p9), %v1833_v59, %v3575_v49  ;;  %v1834_v26 = vld [vmem:[#allocation2 + $0x30] sm:$0xff] (!%p2230_p9)  ;;  %v1835_v48 = vld [vmem:[#allocation2 + $0x38] sm:$0xff] (!%p2230_p9)  ;;  %v1836_v29 = vld [vmem:[#allocation2 + $0x40] sm:$0xff] (!%p2230_p9) }
 0x4e8   : > { %1892 = vst [vmem:[#allocation2] sm:$0xff] (!%p2230_p9), %v1860_v27  ;;  %1893 = vst [vmem:[#allocation2 + $0x8] sm:$0xff] (!%p2230_p9), %v1861_v60  ;;  %v1866_v4 = vadd.f32 (!%p2230_p9), %v1834_v26, %v3579_v17  ;;  %v1867_v24 = vadd.f32 (!%p2230_p9), %v1835_v48, %v3583_v30  ;;  %v1868_v31 = vadd.f32 (!%p2230_p9), %v1836_v29, %v3587_v34  ;;  %v1837_v63 = vld [vmem:[#allocation2 + $0x48] sm:$0xff] (!%p2230_p9)  ;;  %v1838_v15 = vld [vmem:[#allocation2 + $0x50] sm:$0xff] (!%p2230_p9) }
 0x4e9   : > { %1894 = vst [vmem:[#allocation2 + $0x10] sm:$0xff] (!%p2230_p9), %v1862_v3  ;;  %v1839_v11 = vld [vmem:[#allocation2 + $0x58] sm:$0xff] (!%p2230_p9)  ;;  %1895 = vst [vmem:[#allocation2 + $0x18] sm:$0xff] (!%p2230_p9), %v1863_v5  ;;  %v1869_v13 = vadd.f32 (!%p2230_p9), %v1837_v63, %v3591_v37  ;;  %v1870_v28 = vadd.f32 (!%p2230_p9), %v1838_v15, %v3595_v0  ;;  %v1840_v8 = vld [vmem:[#allocation2 + $0x60] sm:$0xff] (!%p2230_p9) }
 0x4ea   : > { %1896 = vst [vmem:[#allocation2 + $0x20] sm:$0xff] (!%p2230_p9), %v1864_v25  ;;  %1897 = vst [vmem:[#allocation2 + $0x28] sm:$0xff] (!%p2230_p9), %v1865_v1  ;;  %v1871_v49 = vadd.f32 (!%p2230_p9), %v1839_v11, %v3599_v9  ;;  %v1841_v16 = vld [vmem:[#allocation2 + $0x68] sm:$0xff] (!%p2230_p9)  ;;  %v1842_v36 = vld [vmem:[#allocation2 + $0x70] sm:$0xff] (!%p2230_p9)  ;;  %v1872_v17 = vadd.f32 (!%p2230_p9), %v1840_v8, %v3603_v40 }
 0x4eb   : > { %1898 = vst [vmem:[#allocation2 + $0x30] sm:$0xff] (!%p2230_p9), %v1866_v4  ;;  %1899 = vst [vmem:[#allocation2 + $0x38] sm:$0xff] (!%p2230_p9), %v1867_v24  ;;  %v1873_v30 = vadd.f32 (!%p2230_p9), %v1841_v16, %v3607_v56  ;;  %v1874_v34 = vadd.f32 (!%p2230_p9), %v1842_v36, %v3611_v62  ;;  %v1843_v51 = vld [vmem:[#allocation2 + $0x78] sm:$0xff] (!%p2230_p9)  ;;  %v1844_v35 = vld [vmem:[#allocation2 + $0x80] sm:$0xff] (!%p2230_p9) }
 0x4ec   : > { %1900 = vst [vmem:[#allocation2 + $0x40] sm:$0xff] (!%p2230_p9), %v1868_v31  ;;  %v1845_v7 = vld [vmem:[#allocation2 + $0x88] sm:$0xff] (!%p2230_p9)  ;;  %1901 = vst [vmem:[#allocation2 + $0x48] sm:$0xff] (!%p2230_p9), %v1869_v13  ;;  %v1875_v37 = vadd.f32 (!%p2230_p9), %v1843_v51, %v3615_v46  ;;  %v1876_v0 = vadd.f32 (!%p2230_p9), %v1844_v35, %v3565_v47  ;;  %v1846_v23 = vld [vmem:[#allocation2 + $0x90] sm:$0xff] (!%p2230_p9) }
 0x4ed   : > { %1902 = vst [vmem:[#allocation2 + $0x50] sm:$0xff] %v1870_v28  ;;  %1903 = vst [vmem:[#allocation2 + $0x58] sm:$0xff] %v1871_v49  ;;  %v1877_v9 = vadd.f32 %v1845_v7, %v3569_v32  ;;  %v1847_v44 = vld [vmem:[#allocation2 + $0x98] sm:$0xff]  ;;  %v1848_v55 = vld [vmem:[#allocation2 + $0xa0] sm:$0xff]  ;;  %v1878_v40 = vadd.f32 %v1846_v23, %v3573_v50 }
 0x4ee   : > { %1904 = vst [vmem:[#allocation2 + $0x60] sm:$0xff] %v1872_v17  ;;  %1905 = vst [vmem:[#allocation2 + $0x68] sm:$0xff] %v1873_v30  ;;  %v1879_v56 = vadd.f32 %v1847_v44, %v3577_v38  ;;  %v1880_v62 = vadd.f32 %v1848_v55, %v3581_v54  ;;  %v1849_v58 = vld [vmem:[#allocation2 + $0xa8] sm:$0xff]  ;;  %v1850_v21 = vld [vmem:[#allocation2 + $0xb0] sm:$0xff] }
 0x4ef   : > { %1906 = vst [vmem:[#allocation2 + $0x70] sm:$0xff] %v1874_v34  ;;  %v1851_v18 = vld [vmem:[#allocation2 + $0xb8] sm:$0xff]  ;;  %1907 = vst [vmem:[#allocation2 + $0x78] sm:$0xff] %v1875_v37  ;;  %v1881_v47 = vadd.f32 %v1849_v58, %v3585_v19  ;;  %v1882_v32 = vadd.f32 %v1850_v21, %v3589_v6  ;;  %v1852_v43 = vld [vmem:[#allocation2 + $0xc0] sm:$0xff] }
 0x4f0   : > { %1908 = vst [vmem:[#allocation2 + $0x80] sm:$0xff] %v1876_v0  ;;  %1909 = vst [vmem:[#allocation2 + $0x88] sm:$0xff] %v1877_v9  ;;  %v1883_v46 = vadd.f32 %v1851_v18, %v3593_v52  ;;  %v1853_v57 = vld [vmem:[#allocation2 + $0xc8] sm:$0xff]  ;;  %v1854_v61 = vld [vmem:[#allocation2 + $0xd0] sm:$0xff]  ;;  %v1884_v50 = vadd.f32 %v1852_v43, %v3597_v22 }
 0x4f1   : > { %1910 = vst [vmem:[#allocation2 + $0x90] sm:$0xff] %v1878_v40  ;;  %1911 = vst [vmem:[#allocation2 + $0x98] sm:$0xff] %v1879_v56  ;;  %v1885_v38 = vadd.f32 %v1853_v57, %v3601_v39  ;;  %v1886_v54 = vadd.f32 %v1854_v61, %v3605_v2  ;;  %v1855_v14 = vld [vmem:[#allocation2 + $0xd8] sm:$0xff]  ;;  %v1856_v33 = vld [vmem:[#allocation2 + $0xe0] sm:$0xff] }
 0x4f2   : > { %1912 = vst [vmem:[#allocation2 + $0xa0] sm:$0xff] %v1880_v62  ;;  %v1857_v27 = vld [vmem:[#allocation2 + $0xe8] sm:$0xff]  ;;  %1913 = vst [vmem:[#allocation2 + $0xa8] sm:$0xff] %v1881_v47  ;;  %v1887_v19 = vadd.f32 %v1855_v14, %v3609_v41  ;;  %v1888_v6 = vadd.f32 %v1856_v33, %v3613_v12  ;;  %v1858_v60 = vld [vmem:[#allocation2 + $0xf0] sm:$0xff] }
 0x4f3   : > { %1914 = vst [vmem:[#allocation2 + $0xb0] sm:$0xff] %v1882_v32  ;;  %1915 = vst [vmem:[#allocation2 + $0xb8] sm:$0xff] %v1883_v46  ;;  %v1889_v52 = vadd.f32 %v1857_v27, %v3617_v42  ;;  %v1859_v3 = vld [vmem:[#allocation2 + $0xf8] sm:$0xff]  ;;  %v1890_v22 = vadd.f32 %v1858_v60, %v3619_v53 }
 0x4f4   : > { %1916 = vst [vmem:[#allocation2 + $0xc0] sm:$0xff] %v1884_v50  ;;  %1917 = vst [vmem:[#allocation2 + $0xc8] sm:$0xff] %v1885_v38  ;;  %v1891_v39 = vadd.f32 %v1859_v3, %v3621_v10 }
 0x4f5   : > { %1918 = vst [vmem:[#allocation2 + $0xd0] sm:$0xff] %v1886_v54  ;;  %1919 = vst [vmem:[#allocation2 + $0xd8] sm:$0xff] %v1887_v19 }
 0x4f6   : > { %1920 = vst [vmem:[#allocation2 + $0xe0] sm:$0xff] %v1888_v6  ;;  %1921 = vst [vmem:[#allocation2 + $0xe8] sm:$0xff] %v1889_v52 }
 0x4f7   : > { %1922 = vst [vmem:[#allocation2 + $0xf0] sm:$0xff] %v1890_v22  ;;  %1923 = vst [vmem:[#allocation2 + $0xf8] sm:$0xff] %v1891_v39 }
 0x4f8 PF: > { %p2231_p10 = scmp.ne.s32.totalorder %s2829_s22, 3 }
 0x4f9   : > { %v1940_v26 = vld [vmem:[#allocation2 + $0x60] sm:$0xff] (!%p2231_p10)  ;;  %v1941_v48 = vld [vmem:[#allocation2 + $0x68] sm:$0xff] (!%p2231_p10)  ;;  %v1942_v29 = vld [vmem:[#allocation2 + $0x70] sm:$0xff] (!%p2231_p10) }
 0x4fa   : > { %1927 = sbr.rel (%p2231_p10) target bundleno = 1290 (0x50a), region = 60  ;;  %v1928_v2 = vld [vmem:[#allocation2] sm:$0xff] (!%p2231_p10)  ;;  %v1929_v41 = vld [vmem:[#allocation2 + $0x8] sm:$0xff] (!%p2231_p10)  ;;  %1972 = vst [vmem:[%s3020_s7 + $0x60] sm:$0xff] (!%p2231_p10), %v1940_v26  ;;  %1973 = vst [vmem:[%s3020_s7 + $0x68] sm:$0xff] (!%p2231_p10), %v1941_v48 }
 0x4fb   : > { %v1930_v12 = vld [vmem:[#allocation2 + $0x10] sm:$0xff] (!%p2231_p10)  ;;  %1960 = vst [vmem:[%s3020_s7] sm:$0xff] (!%p2231_p10), %v1928_v2  ;;  %1961 = vst [vmem:[%s3020_s7 + $0x8] sm:$0xff] (!%p2231_p10), %v1929_v41  ;;  %v1931_v42 = vld [vmem:[#allocation2 + $0x18] sm:$0xff] (!%p2231_p10) }
 0x4fc   : > { %1962 = vst [vmem:[%s3020_s7 + $0x10] sm:$0xff] (!%p2231_p10), %v1930_v12  ;;  %v1932_v53 = vld [vmem:[#allocation2 + $0x20] sm:$0xff] (!%p2231_p10)  ;;  %v1933_v10 = vld [vmem:[#allocation2 + $0x28] sm:$0xff] (!%p2231_p10)  ;;  %1963 = vst [vmem:[%s3020_s7 + $0x18] sm:$0xff] (!%p2231_p10), %v1931_v42 }
 0x4fd   : > { %1964 = vst [vmem:[%s3020_s7 + $0x20] sm:$0xff] (!%p2231_p10), %v1932_v53  ;;  %1965 = vst [vmem:[%s3020_s7 + $0x28] sm:$0xff] (!%p2231_p10), %v1933_v10  ;;  %v1934_v20 = vld [vmem:[#allocation2 + $0x30] sm:$0xff] (!%p2231_p10)  ;;  %v1935_v45 = vld [vmem:[#allocation2 + $0x38] sm:$0xff] (!%p2231_p10) }
 0x4fe   : > { %v1936_v59 = vld [vmem:[#allocation2 + $0x40] sm:$0xff] (!%p2231_p10)  ;;  %1966 = vst [vmem:[%s3020_s7 + $0x30] sm:$0xff] (!%p2231_p10), %v1934_v20  ;;  %1967 = vst [vmem:[%s3020_s7 + $0x38] sm:$0xff] (!%p2231_p10), %v1935_v45  ;;  %v1937_v5 = vld [vmem:[#allocation2 + $0x48] sm:$0xff] (!%p2231_p10) }
 0x4ff   : > { %1968 = vst [vmem:[%s3020_s7 + $0x40] sm:$0xff] (!%p2231_p10), %v1936_v59  ;;  %v1938_v25 = vld [vmem:[#allocation2 + $0x50] sm:$0xff] (!%p2231_p10)  ;;  %v1939_v1 = vld [vmem:[#allocation2 + $0x58] sm:$0xff] (!%p2231_p10)  ;;  %1969 = vst [vmem:[%s3020_s7 + $0x48] sm:$0xff] (!%p2231_p10), %v1937_v5 }
 0x500   : > { %1970 = vst [vmem:[%s3020_s7 + $0x50] sm:$0xff] (!%p2231_p10), %v1938_v25  ;;  %1971 = vst [vmem:[%s3020_s7 + $0x58] sm:$0xff] (!%p2231_p10), %v1939_v1  ;;  %v1943_v4 = vld [vmem:[#allocation2 + $0x78] sm:$0xff] (!%p2231_p10)  ;;  %v1944_v24 = vld [vmem:[#allocation2 + $0x80] sm:$0xff] (!%p2231_p10) }
 0x501   : > { %1974 = vst [vmem:[%s3020_s7 + $0x70] sm:$0xff] %v1942_v29  ;;  %v1945_v31 = vld [vmem:[#allocation2 + $0x88] sm:$0xff]  ;;  %1975 = vst [vmem:[%s3020_s7 + $0x78] sm:$0xff] %v1943_v4  ;;  %v1946_v63 = vld [vmem:[#allocation2 + $0x90] sm:$0xff] }
 0x502   : > { %1976 = vst [vmem:[%s3020_s7 + $0x80] sm:$0xff] %v1944_v24  ;;  %1977 = vst [vmem:[%s3020_s7 + $0x88] sm:$0xff] %v1945_v31  ;;  %v1947_v15 = vld [vmem:[#allocation2 + $0x98] sm:$0xff]  ;;  %v1948_v11 = vld [vmem:[#allocation2 + $0xa0] sm:$0xff] }
 0x503   : > { %1978 = vst [vmem:[%s3020_s7 + $0x90] sm:$0xff] %v1946_v63  ;;  %1979 = vst [vmem:[%s3020_s7 + $0x98] sm:$0xff] %v1947_v15  ;;  %v1949_v13 = vld [vmem:[#allocation2 + $0xa8] sm:$0xff]  ;;  %v1950_v28 = vld [vmem:[#allocation2 + $0xb0] sm:$0xff] }
 0x504   : > { %1980 = vst [vmem:[%s3020_s7 + $0xa0] sm:$0xff] %v1948_v11  ;;  %v1951_v49 = vld [vmem:[#allocation2 + $0xb8] sm:$0xff]  ;;  %1981 = vst [vmem:[%s3020_s7 + $0xa8] sm:$0xff] %v1949_v13  ;;  %v1952_v8 = vld [vmem:[#allocation2 + $0xc0] sm:$0xff] }
 0x505   : > { %1982 = vst [vmem:[%s3020_s7 + $0xb0] sm:$0xff] %v1950_v28  ;;  %1983 = vst [vmem:[%s3020_s7 + $0xb8] sm:$0xff] %v1951_v49  ;;  %v1953_v16 = vld [vmem:[#allocation2 + $0xc8] sm:$0xff]  ;;  %v1954_v36 = vld [vmem:[#allocation2 + $0xd0] sm:$0xff] }
 0x506   : > { %1984 = vst [vmem:[%s3020_s7 + $0xc0] sm:$0xff] %v1952_v8  ;;  %1985 = vst [vmem:[%s3020_s7 + $0xc8] sm:$0xff] %v1953_v16  ;;  %v1955_v17 = vld [vmem:[#allocation2 + $0xd8] sm:$0xff]  ;;  %v1956_v30 = vld [vmem:[#allocation2 + $0xe0] sm:$0xff] }
 0x507   : > { %1986 = vst [vmem:[%s3020_s7 + $0xd0] sm:$0xff] %v1954_v36  ;;  %v1957_v34 = vld [vmem:[#allocation2 + $0xe8] sm:$0xff]  ;;  %1987 = vst [vmem:[%s3020_s7 + $0xd8] sm:$0xff] %v1955_v17  ;;  %v1958_v51 = vld [vmem:[#allocation2 + $0xf0] sm:$0xff] }
 0x508   : > { %1988 = vst [vmem:[%s3020_s7 + $0xe0] sm:$0xff] %v1956_v30  ;;  %1989 = vst [vmem:[%s3020_s7 + $0xe8] sm:$0xff] %v1957_v34  ;;  %v1959_v35 = vld [vmem:[#allocation2 + $0xf8] sm:$0xff] }
 0x509   : > { %1990 = vst [vmem:[%s3020_s7 + $0xf0] sm:$0xff] %v1958_v51  ;;  %1991 = vst [vmem:[%s3020_s7 + $0xf8] sm:$0xff] %v1959_v35 }
 0x50a PF: > { %s2240_s22 = sshll.u32 %s2833_s23, 5  ;;  %s2235_s28 = sshll.u32 %s2837_s24, 6 }
 0x50b   : > { %s2009_s29 = sshll.u32 %s3020_s7, 4  ;;  %s2006_s8 = sadd.s32 %s2240_s22, %s2235_s28  ;;  %s3728_s29 = int_to_ptr.vmem [resolvable:$true] %s2009_s29 }
 0x50c   : > { %s2236_s9 = sshll.u32 %s2006_s8, 7  ;;  %s3836_s30 = sand.u32 1, %s2817_s19  }
 0x50d   : > { %s3733_s17 = scalar_lea.hbm %s3806_s5, %s2236_s9  ;;  %s3737_s15 = scalar_lea.sflag [#allocation7], %s3836_s30 }
 0x50e   : > { %s2731_s16 = scalar_lea.vmem %s3728_s29, 4096  ;;  %s2864_s23 = smov [#allocation6]  }
 0x50f   : > { %p2732_p11 = scmp.ne.s32.totalorder %s3728_s29, %s2731_s16  ;;  %s2735_s24 = sshll.u32 %s2864_s23, 4  ;;  %s2736_s24 = int_to_ptr.vmem [resolvable:$false] %s2735_s24 }
 0x510   : > { %s2737_s13 = scalar_lea.vmem %s2736_s24, 8192  ;;  %p2738_p0 = scmp.lt.s32.totalorder %s3728_s29, %s2736_s24 }
 0x511   : > { %p2733_p12 = pnand %p2732_p11, %p2970_p5  ;;  %p2739_p1 = scmp.lt.s32.totalorder %s2737_s13, %s2731_s16 }
 0x513   : > { %p2734_p13 = pneg %p2733_p12  ;;  %p2740_p2 = por %p2739_p1, %p2738_p0 }
 0x515   : > { %p2741_p3 = pnand %p2740_p2, %p2734_p13 }
 0x517   : > { %2744 = shalt.err (!%p2741_p3)
}
 0x518   : > { %s2745_s14 = scalar_lea.hbm %s3733_s17, 4096  ;;  %s2749_s18 = scalar_lea.hbm %s3806_s5, 16384 }
 0x519   : > { %p2746_p4 = scmp.ne.s32.totalorder %s3733_s17, %s2745_s14  ;;  %p2750_p9 = scmp.lt.u32.totalorder %s3733_s17, %s3806_s5 }
 0x51a   : > { %p2751_p10 = scmp.lt.u32.totalorder %s2749_s18, %s2745_s14  ;;  %p2753_p12 = scmp.lt.u32.totalorder %s2745_s14, %s3733_s17 }
 0x51b   : > { %p2747_p6 = pnand %p2746_p4, %p2970_p5 }
 0x51c   : > { %p2752_p11 = por %p2751_p10, %p2750_p9 }
 0x51d   : > { %p2748_p8 = pneg %p2747_p6 }
 0x51e   : > { %p2754_p13 = por %p2753_p12, %p2752_p11 }
 0x520   : > { %p2755_p0 = pnand %p2754_p13, %p2748_p8 }
 0x522   : > { %2758 = shalt.err (!%p2755_p0)
}
 0x523   : > { %s2865_s26 = smov 256   ;;  %s2866_s21 = smov 16  }
 0x524   : > { %2521 = dma.vmem_to_hbm [thread:$0]  (%p2970_p5), %s3728_s29, 4096, %s3733_s17, %s3737_s15, %s2865_s26, %s2865_s26, %s2866_s21  }
 0x525 PF: > { %s3837_s27 = sld [smem:[#allocation15_spill]]  ;;  %s3838_s22 = sld [smem:[#allocation9_spill]] }
 0x52b   : > { %p2527_p1 = scmp.ge.s32.totalorder %s3837_s27, 2  ;;  %s2024_s8 = sand.u32 1, %s3838_s22  }
 0x52c   : > { %s2025_s9 = scalar_lea.sflag [#allocation7], %s2024_s8 }
 0x52d   : > { %p2524_p2 = pnand %p2527_p1, %p2977_p7 }
 0x52f   : > { %2808 = dma.done.wait (!%p2524_p2), %s2025_s9, 4096  }
 0x530   : > { %2810 = vsyncadd (!%p2524_p2), %s2025_s9, 4294963200  ;;  %s18_s29 = sadd.s32 1, %s3837_s27   ;;  %s3840_s10 = sld [smem:[#allocation10_spill]] }
 0x531   : > { %p15_p3 = scmp.ge.s32.totalorder %s18_s29, 34   ;;  %s3841_s20 = sld [smem:[#allocation21_spill]] }
 0x532   : > { %s3842_s21 = sld [smem:[#allocation11_spill]]  ;;  %s3843_s22 = sld [smem:[#allocation12_spill]] }
 0x533   : > { %s3844_s23 = sld [smem:[#allocation13_spill]]  ;;  %s3845_s24 = sld [smem:[#allocation14_spill]] }
 0x534   : > { %s3846_s25 = sld [smem:[#allocation16_spill]]  ;;  %s3847_s26 = sld [smem:[#allocation17_spill]] }
 0x535   : > { %s3848_s27 = sld [smem:[#allocation19_spill]]  ;;  %s3849_s28 = sld [smem:[#allocation20_spill]] }
 0x536   : > { %s3850_s18 = smov %s2817_s19  ;;  %s3851_s19 = smov %s3840_s10 }
 0x537   :  { %17 = sbr.rel (!%p15_p3) target bundleno = 7 (0x7), region = 102 }
 0x53e   :  { %2030 = vsyncpa [#allocation7], 1 }
 0x53f   :  { %2032 = vsyncpa [#allocation7 + $0x1], 1 }

</bundles_post_ra>
